<compile_context>
chip_gen: v5e
topology: v5e:2x2
jax: 0.10.0
libtpu: 0.0.40
codegen_flags: <defaults>
</compile_context>

<pallas_src>
import jax
import jax.numpy as jnp
from jax.experimental import pallas as pl
from jax.experimental.pallas import tpu as pltpu

LANE = 128
SUB = 8


def _round_up(n, m):
    return (n + m - 1) // m * m


def _vmem_budget_bytes():
    """Generation-aware VMEM budget (v7x: 64 MiB/TC, v5e/v6e: 128 MiB)."""
    try:
        cap = getattr(pltpu.get_tpu_info(), "vmem_capacity_bytes", None)
        if cap:
            return int(cap) // 2          # leave half for weights / out / headroom
    except Exception:
        pass
    return 32 << 20                       # conservative fallback, safe everywhere


def _pick_tm(B, row_bytes):
    """Batch-tile rows: large enough to amortize per-step pipeline overhead,
    small enough for the double-buffered VMEM footprint, and >=2 grid steps
    for mid-size B so v7x's two TensorCores both get work."""
    budget = _vmem_budget_bytes()
    tm_cap = max(LANE, min(2048, (budget // max(row_bytes, 1)) // LANE * LANE))
    if B <= 2 * LANE:
        return LANE                       # one or two small lane-dense tiles
    return int(min(tm_cap, _round_up(pl.cdiv(B, 2), LANE)))


def _linearnet1_kernel(x_ref, w1_ref, b1_ref, w23_ref, b23_ref, o_ref):
    # ---- Layer 1 on the MXU: bf16 inputs, f32 accumulate ---------------------
    # x arrives in its HBM dtype; the bf16 cast is a VPU op hidden under DMA.
    x_bf = x_ref[...].astype(jnp.bfloat16)
    h1 = jnp.dot(x_bf, w1_ref[...], preferred_element_type=jnp.float32)
    h1 = h1 + b1_ref[...]                       # (TM, H1p); padded lanes stay 0

    # ---- Folded layers 2+3: y = h1 @ (W2 @ w3) + (b2 @ w3 + b3) --------------
    # Contract as (1, H1p) @ (H1p, TM) so the per-row scalars land directly in
    # a packed lane-dense (1, TM) layout (4 B/row writeback, unmasked vst).
    h1_bf = h1.astype(jnp.bfloat16)
    y = jnp.dot(w23_ref[...], h1_bf.T, preferred_element_type=jnp.float32)
    y = y + b23_ref[0, 0]                       # SMEM scalar bias
    y = y * y                                   # final `x ** 2`
    o_ref[...] = y.astype(o_ref.dtype)


def prepare_params(params):
    """Pad / cast / fold the weights once (reused across forward calls)."""
    w1, b1, w2, b2, w3, b3 = params
    D, H1 = w1.shape
    H2 = w2.shape[1]
    H1p = _round_up(H1, LANE)

    w1_p = jnp.zeros((D, H1p), jnp.bfloat16).at[:, :H1].set(w1.astype(jnp.bfloat16))
    b1_p = jnp.zeros((1, H1p), jnp.float32).at[:, :H1].set(
        b1.reshape(1, H1).astype(jnp.float32))

    # Layers 2 and 3 are linear with nothing between them -> algebraically exact:
    #   (h1 @ W2 + b2) @ w3 + b3 == h1 @ (W2 @ w3) + (b2 @ w3 + b3)
    w23 = (w2.astype(jnp.float32) @ w3.astype(jnp.float32)).reshape(1, H1)
    w23_p = jnp.zeros((1, H1p), jnp.bfloat16).at[:, :H1].set(w23.astype(jnp.bfloat16))
    b23 = (b2.reshape(1, H2).astype(jnp.float32) @ w3.astype(jnp.float32)
           + b3.reshape(1, 1).astype(jnp.float32))          # (1, 1) SMEM scalar
    return w1_p, b1_p, w23_p, b23


def linearnet1_forward(x_nchw, prepared):
    """x_nchw: (B, ...) array. Returns (B, 1) float32."""
    w1_p, b1_p, w23_p, b23 = prepared
    B = x_nchw.shape[0]
    x = x_nchw.reshape(B, -1)                     # torch .view(B, -1)
    D = x.shape[1]
    H1p = w1_p.shape[1]
    assert w1_p.shape[0] == D, "dimen mismatch between x and params"

    itemsize = jnp.dtype(x.dtype).itemsize
    TM = _pick_tm(B, 2 * D * itemsize)            # 2x = double-buffered x rows
    grid_m = int(pl.cdiv(B, TM))
    Bp = grid_m * TM

    # VMEM: double-buffered x tile + (double-buffered) resident weights + out.
    vmem_need = (2 * TM * D * itemsize
                 + 2 * (D * H1p * 2 + 2 * H1p * 4)
                 + 2 * TM * 4)
    vmem_limit = int(min(max(3 * vmem_need // 2, 8 << 20), 48 << 20))

    flops = 2 * Bp * D * H1p + 2 * Bp * H1p + Bp
    bytes_accessed = (B * D * itemsize            # x (dominant operand)
                      + D * H1p * 2 + 2 * H1p * 4 + 4
                      + Bp * 4)                   # packed scalar output

    out = pl.pallas_call(
        _linearnet1_kernel,
        out_shape=jax.ShapeDtypeStruct((1, Bp), jnp.float32),
        grid=(grid_m,),
        in_specs=[
            pl.BlockSpec((TM, D), lambda i: (i, 0)),        # x: batch-tiled stream
            pl.BlockSpec((D, H1p), lambda i: (0, 0)),       # weights: VMEM-resident
            pl.BlockSpec((1, H1p), lambda i: (0, 0)),
            pl.BlockSpec((1, H1p), lambda i: (0, 0)),
            pl.BlockSpec(memory_space=pltpu.MemorySpace.SMEM),  # b23 scalar
        ],
        out_specs=pl.BlockSpec((1, TM), lambda i: (0, i)),  # packed, lane-dense
        compiler_params=pltpu.CompilerParams(
            dimension_semantics=("parallel",),
            vmem_limit_bytes=vmem_limit,
        ),
        cost_estimate=pl.CostEstimate(
            flops=flops, transcendentals=0, bytes_accessed=bytes_accessed),
    )(x, w1_p, b1_p, w23_p, b23)

    return out[0, :B].reshape(B, 1)


def init_params(key, dimen):
    """Deterministic init mimicking nn.Linear default (U(-1/sqrt(fan_in), +1/sqrt(fan_in)))."""
    h1, h2 = dimen // 10, dimen // 100
    ks = jax.random.split(key, 6)

    def lin(kw, kb, fan_in, fan_out):
        bound = 1.0 / jnp.sqrt(fan_in)
        w = jax.random.uniform(kw, (fan_in, fan_out), jnp.float32, -bound, bound)
        b = jax.random.uniform(kb, (fan_out,), jnp.float32, -bound, bound)
        return w, b

    w1, b1 = lin(ks[0], ks[1], dimen, h1)
    w2, b2 = lin(ks[2], ks[3], h1, h2)
    w3, b3 = lin(ks[4], ks[5], h2, 1)
    return (w1, b1, w2, b2, w3, b3)


if __name__ == "__main__":
    key = jax.random.PRNGKey(0)
    k_x, k_p = jax.random.split(key)

    # Small shapes consistent with the module: dimen = C*H*W = 4*10*20 = 800
    # -> hidden sizes 80, 8, 1.
    B, C, Hs, Ws = 2, 4, 10, 20
    dimen = C * Hs * Ws

    x = jax.random.normal(k_x, (B, C, Hs, Ws), dtype=jnp.float32)
    params = init_params(k_p, dimen)
    prepared = prepare_params(params)          # pad / cast / fold once, reuse

    out = linearnet1_forward(x, prepared)
    out = jax.block_until_ready(out)
    assert out.shape == (B, 1)

    w1, b1, w2, b2, w3, b3 = params
    xf = x.reshape(B, -1)

    # Reference 1: mirrors the kernel's precision (bf16 MXU layer-1, folded 2+3).
    h1 = jnp.dot(xf.astype(jnp.bfloat16), w1.astype(jnp.bfloat16),
                 preferred_element_type=jnp.float32) + b1
    w23 = w2 @ w3
    b23 = b2 @ w3 + b3
    ref_bf = (jnp.dot(h1.astype(jnp.bfloat16), w23.astype(jnp.bfloat16),
                      preferred_element_type=jnp.float32) + b23) ** 2

    # Reference 2: true f32 layer-by-layer PyTorch semantics.  The kernel runs
    # its matmuls in bf16 (intended speed/precision trade-off on the streamed
    # operand), so this check is intentionally loose.
    ref_f32 = (((xf @ w1 + b1) @ w2 + b2) @ w3 + b3) ** 2

    assert jnp.allclose(out, ref_bf, atol=1e-3, rtol=1e-2), (out, ref_bf)
    assert jnp.allclose(out, ref_f32, atol=5e-2, rtol=1e-1), (out, ref_f32)

    print("KERNEL_OK")
</pallas_src>

<mosaic_0001>
module attributes {stable_mosaic.version = 11 : i64} {
  func.func @_linearnet1_kernel(%arg0: i32, %arg1: memref<128x800xf32, #tpu.memory_space<vmem>>, %arg2: memref<800x128xbf16, #tpu.memory_space<vmem>>, %arg3: memref<1x128xf32, #tpu.memory_space<vmem>>, %arg4: memref<1x128xbf16, #tpu.memory_space<vmem>>, %arg5: memref<1x1xf32, #tpu.memory_space<smem>>, %arg6: memref<1x128xf32, #tpu.memory_space<vmem>>) attributes {dimension_semantics = [#tpu.dimension_semantics<parallel>], iteration_bounds = array<i64: 1>, scalar_prefetch = 0 : i64, scratch_operands = 0 : i64, tpu.core_type = #tpu.core_type<tc>, window_params = [{transform_indices = @transform_0, window_bounds = array<i64: 128, 800>}, {pipeline_mode = #tpu.pipeline_mode<synchronous>, transform_indices = @transform_1, window_bounds = array<i64: 800, 128>}, {pipeline_mode = #tpu.pipeline_mode<synchronous>, transform_indices = @transform_2, window_bounds = array<i64: 1, 128>}, {pipeline_mode = #tpu.pipeline_mode<synchronous>, transform_indices = @transform_3, window_bounds = array<i64: 1, 128>}, {transform_indices = @transform_4, window_bounds = array<i64: 1, 1>}, {transform_indices = @transform_5, window_bounds = array<i64: 1, 128>}]} {
    %c0 = arith.constant 0 : index
    %c0_0 = arith.constant 0 : index
    %0 = vector.load %arg1[%c0, %c0_0] : memref<128x800xf32, #tpu.memory_space<vmem>>, vector<128x800xf32>
    %1 = arith.truncf %0 : vector<128x800xf32> to vector<128x800xbf16>
    %c0_1 = arith.constant 0 : index
    %c0_2 = arith.constant 0 : index
    %2 = vector.load %arg2[%c0_1, %c0_2] : memref<800x128xbf16, #tpu.memory_space<vmem>>, vector<800x128xbf16>
    %cst = arith.constant dense<0.000000e+00> : vector<128x128xf32>
    %3 = tpu.matmul %1, %2, %cst {dimension_numbers = #tpu.dot_dimension_numbers<[1], [0], [0], [1], [0, 0, 1, 1], [], []>} : vector<128x800xbf16>, vector<800x128xbf16>, vector<128x128xf32> -> vector<128x128xf32>
    %c0_3 = arith.constant 0 : index
    %c0_4 = arith.constant 0 : index
    %4 = vector.load %arg3[%c0_3, %c0_4] : memref<1x128xf32, #tpu.memory_space<vmem>>, vector<1x128xf32>
    %5 = vector.broadcast %4 : vector<1x128xf32> to vector<128x128xf32>
    %6 = arith.addf %3, %5 : vector<128x128xf32>
    %7 = arith.truncf %6 : vector<128x128xf32> to vector<128x128xbf16>
    %c0_5 = arith.constant 0 : index
    %c0_6 = arith.constant 0 : index
    %8 = vector.load %arg4[%c0_5, %c0_6] : memref<1x128xbf16, #tpu.memory_space<vmem>>, vector<1x128xbf16>
    %9 = tpu.transpose %7, [1, 0] : vector<128x128xbf16> -> vector<128x128xbf16>
    %cst_7 = arith.constant dense<0.000000e+00> : vector<1x128xf32>
    %10 = tpu.matmul %8, %9, %cst_7 {dimension_numbers = #tpu.dot_dimension_numbers<[1], [0], [0], [1], [0, 0, 1, 1], [], []>} : vector<1x128xbf16>, vector<128x128xbf16>, vector<1x128xf32> -> vector<1x128xf32>
    %c0_8 = arith.constant 0 : index
    %c0_9 = arith.constant 0 : index
    %11 = memref.load %arg5[%c0_8, %c0_9] : memref<1x1xf32, #tpu.memory_space<smem>>
    %12 = vector.broadcast %11 : f32 to vector<1x128xf32>
    %13 = arith.addf %10, %12 : vector<1x128xf32>
    %14 = arith.mulf %13, %13 : vector<1x128xf32>
    %c0_10 = arith.constant 0 : index
    %c0_11 = arith.constant 0 : index
    %15 = vector.load %arg6[%c0_10, %c0_11] : memref<1x128xf32, #tpu.memory_space<vmem>>, vector<1x128xf32>
    tpu.vector_store %arg6[%c0_10, %c0_11], %14 {strides = array<i32>} : memref<1x128xf32, #tpu.memory_space<vmem>>, vector<1x128xf32>,
    return
  }
  func.func @transform_0(%arg0: i32) -> (i32, i32) {
    %c0_i32 = arith.constant 0 : i32
    %c0_i32_0 = arith.constant 0 : i32
    return %arg0, %c0_i32 : i32, i32
  }
  func.func @transform_1(%arg0: i32) -> (i32, i32) {
    %c0_i32 = arith.constant 0 : i32
    %c0_i32_0 = arith.constant 0 : i32
    %c0_i32_1 = arith.constant 0 : i32
    return %c0_i32, %c0_i32_0 : i32, i32
  }
  func.func @transform_2(%arg0: i32) -> (i32, i32) {
    %c0_i32 = arith.constant 0 : i32
    %c0_i32_0 = arith.constant 0 : i32
    %c0_i32_1 = arith.constant 0 : i32
    return %c0_i32, %c0_i32_0 : i32, i32
  }
  func.func @transform_3(%arg0: i32) -> (i32, i32) {
    %c0_i32 = arith.constant 0 : i32
    %c0_i32_0 = arith.constant 0 : i32
    %c0_i32_1 = arith.constant 0 : i32
    return %c0_i32, %c0_i32_0 : i32, i32
  }
  func.func @transform_4(%arg0: i32) -> (i32, i32) {
    %c0_i32 = arith.constant 0 : i32
    %c0_i32_0 = arith.constant 0 : i32
    %c0_i32_1 = arith.constant 0 : i32
    return %c0_i32, %c0_i32_0 : i32, i32
  }
  func.func @transform_5(%arg0: i32) -> (i32, i32) {
    %c0_i32 = arith.constant 0 : i32
    %c0_i32_0 = arith.constant 0 : i32
    return %c0_i32, %arg0 : i32, i32
  }
}

</mosaic_0001>

<bundles_post_ra>
// kernel: tpu_custom_call.1
= control target key start
LH: loop header
LB: loop body
LE: loop exit
PB: predicated region body
PF: predicated region fallthrough
CT: control target
= control target key end

     0   :  { %11 = vsyncpa [#allocation4], 0  ;;  %s2271_s0 = inlined_call_operand.hbm [shape: f32[2,800], index: 0, kind: input, shape index: {}]   ;;  %s2272_s1 = inlined_call_operand.hbm [shape: bf16[800,128], index: 1, kind: input, shape index: {}]   ;;  %s2273_s2 = inlined_call_operand.vmem [shape: f32[1,128], index: 2, kind: input, shape index: {}]   ;;  %s2274_s3 = inlined_call_operand.vmem [shape: bf16[1,128], index: 3, kind: input, shape index: {}]   ;;  %s2275_s4 = inlined_call_operand.<no memory space> [shape: f32[1,1], index: 4, kind: input, shape index: {}]   ;;  %s2276_s5 = inlined_call_operand.hbm [shape: f32[1,128], index: 5, kind: output, shape index: {}]  }
   0x1   :  { %12 = vsyncpa [#allocation7], 0 }
   0x2   :  { %13 = vsyncpa [#allocation5], 0 }
   0x3   :  { %17 = vsyncadd [#allocation4], 14112  ;;  %s18_s20 = sshll.u32 %s2271_s0, 4  ;;  %s1904_s21 = smov [#allocation3]   ;;  %s19_s20 = int_to_ptr.hbm [resolvable:$true] %s18_s20 }
   0x4   :  { %s20_s22 = sshll.u32 %s1904_s21, 4  ;;  %s31_s25 = sshll.u32 %s2272_s1, 4  ;;  %s21_s22 = int_to_ptr.vmem [resolvable:$true] %s20_s22  ;;  %s32_s25 = int_to_ptr.hbm [resolvable:$true] %s31_s25 }
   0x5   :  { %s1905_s26 = smov 224   ;;  %s1906_s27 = smov 14  }
   0x6   :  { %26 = dma.hbm_to_vmem [thread:$0]  %s19_s20, 224, %s21_s22, [#allocation4], %s1905_s26, %s1905_s26, %s1906_s27  }
   0x7   :  { %s1907_s28 = smov [#allocation6]   ;;  %s1908_s30 = smov 64  }
   0x8   :  { %s33_s29 = sshll.u32 %s1907_s28, 4  ;;  %s1909_s6 = smov 4   ;;  %s34_s29 = int_to_ptr.vmem [resolvable:$true] %s33_s29 }
   0x9   :  { %39 = dma.hbm_to_vmem [thread:$0]  %s32_s25, 6400, %s34_s29, [#allocation7], %s1908_s30, %s1908_s30, %s1909_s6  }
   0xa   :  { %1898 = dma.done.wait [#allocation4], 14336  }
   0xb   :  { %1899 = vsyncadd [#allocation4], 4294952960 }
   0xc   :  { %1900 = dma.done.wait [#allocation7], 6400  }
   0xd   :  { %1901 = vsyncadd [#allocation7], 4294960896  ;;  %v1757_v0 = vld [vmem:[#allocation6 + $0x38] sm:$0xff]  ;;  %v1756_v3 = vld [vmem:[#allocation6 + $0x30] sm:$0xff]  ;;  %vm1130_vm0 = vcmask 261120   ;;  %s1910_s10 = smov [#allocation8]  }
   0xe   :  { %v1765_v1 = vld [vmem:[#allocation6 + $0x78] sm:$0xff]  ;;  %1155 = vmatpush.bf16.msra.mxu0 %v1757_v0  ;;  %v1764_v4 = vld [vmem:[#allocation6 + $0x70] sm:$0xff]  ;;  %1800 = vmatpush.bf16.msra.mxu3 %v1757_v0  ;;  %v1755_v6 = vld [vmem:[#allocation6 + $0x28] sm:$0xff]  ;;  %s1529_s11 = sshll.u32 %s1910_s10, 4  ;;  %s1531_s14 = sshll.u32 %s2276_s5, 4  ;;  %s1530_s11 = int_to_ptr.vmem [resolvable:$true] %s1529_s11  ;;  %s1532_s14 = int_to_ptr.hbm [resolvable:$true] %s1531_s14 }
   0xf   :  { %v1773_v2 = vld [vmem:[#allocation6 + $0xb8] sm:$0xff]  ;;  %1204 = vmatpush.bf16.msra.mxu1 %v1765_v1  ;;  %v1772_v5 = vld [vmem:[#allocation6 + $0xb0] sm:$0xff]  ;;  %v1763_v7 = vld [vmem:[#allocation6 + $0x68] sm:$0xff] }
  0x10   :  { %1253 = vmatpush.bf16.msra.mxu2 %v1773_v2  ;;  %v1771_v8 = vld [vmem:[#allocation6 + $0xa8] sm:$0xff]  ;;  %v55_v9 = vld [vmem:[#allocation3] sm:$0xff]  ;;  %v1753_v16 = vld [vmem:[#allocation6 + $0x18] sm:$0xff] }
  0x11   :  { %v57_v10 = vld [vmem:[#allocation3 + $0xe] sm:$0xff]  ;;  %v59_v11 = vld [vmem:[#allocation3 + $0x1c] sm:$0xff]  ;;  %311 = vst [vmem:[#allocation1] ss:$4 sm:$0xff] %v55_v9  ;;  %v65_v23 = vld [vmem:[#allocation3 + $0x46] sm:$0xff] }
  0x12   :  { %1156 = vmatpush.bf16.msra.mxu0 %v1756_v3  ;;  %1801 = vmatpush.bf16.msra.mxu3 %v1756_v3  ;;  %v61_v12 = vld [vmem:[#allocation3 + $0x2a] sm:$0xff]  ;;  %v1754_v13 = vld [vmem:[#allocation6 + $0x20] sm:$0xff]  ;;  %313 = vst [vmem:[#allocation1 + $0x1] ss:$4 sm:$0xff] %v57_v10  ;;  %v1761_v17 = vld [vmem:[#allocation6 + $0x58] sm:$0xff] }
  0x13   :  { %1205 = vmatpush.bf16.msra.mxu1 %v1764_v4  ;;  %v1762_v14 = vld [vmem:[#allocation6 + $0x60] sm:$0xff]  ;;  %315 = vst [vmem:[#allocation1 + $0x2] ss:$4 sm:$0xff] %v59_v11  ;;  %v1769_v18 = vld [vmem:[#allocation6 + $0x98] sm:$0xff]  ;;  %v1752_v19 = vld [vmem:[#allocation6 + $0x10] sm:$0xff] }
  0x14   :  { %1254 = vmatpush.bf16.msra.mxu2 %v1772_v5  ;;  %v1770_v15 = vld [vmem:[#allocation6 + $0xa0] sm:$0xff]  ;;  %317 = vst [vmem:[#allocation1 + $0x3] ss:$4 sm:$0xff] %v61_v12  ;;  %v1760_v20 = vld [vmem:[#allocation6 + $0x50] sm:$0xff]  ;;  %v63_v22 = vld [vmem:[#allocation3 + $0x38] sm:$0xff] }
  0x15   :  { %v1768_v21 = vld [vmem:[#allocation6 + $0x90] sm:$0xff]  ;;  %v69_v29 = vld [vmem:[#allocation3 + $0x62] sm:$0xff]  ;;  %v1789_v36 = vld [vmem:[#allocation6 + $0x138] sm:$0xff] }
  0x16   :  { %1157 = vmatpush.bf16.msra.mxu0 %v1755_v6  ;;  %1802 = vmatpush.bf16.msra.mxu3 %v1755_v6  ;;  %v67_v24 = vld [vmem:[#allocation3 + $0x54] sm:$0xff]  ;;  %v1751_v30 = vld [vmem:[#allocation6 + $0x8] sm:$0xff]  ;;  %v1750_v33 = vld [vmem:[#allocation6] sm:$0xff] }
  0x17   :  { %1206 = vmatpush.bf16.msra.mxu1 %v1763_v7  ;;  %v1759_v31 = vld [vmem:[#allocation6 + $0x48] sm:$0xff]  ;;  %v1758_v34 = vld [vmem:[#allocation6 + $0x40] sm:$0xff]  ;;  %v1788_v37 = vld [vmem:[#allocation6 + $0x130] sm:$0xff] }
  0x18   :  { %1255 = vmatpush.bf16.msra.mxu2 %v1771_v8  ;;  %v1767_v32 = vld [vmem:[#allocation6 + $0x88] sm:$0xff]  ;;  %v1766_v35 = vld [vmem:[#allocation6 + $0x80] sm:$0xff]  ;;  %v71_v38 = vld [vmem:[#allocation3 + $0x70] sm:$0xff] }
  0x19   :  { %v73_v39 = vld [vmem:[#allocation3 + $0x7e] sm:$0xff]  ;;  %v75_v40 = vld [vmem:[#allocation3 + $0x8c] sm:$0xff]  ;;  %v81_v52 = vld [vmem:[#allocation3 + $0xb6] sm:$0xff] }
  0x1a   :  { %1158 = vmatpush.bf16.msra.mxu0 %v1754_v13  ;;  %1803 = vmatpush.bf16.msra.mxu3 %v1754_v13  ;;  %v77_v48 = vld [vmem:[#allocation3 + $0x9a] sm:$0xff]  ;;  %v1787_v49 = vld [vmem:[#allocation6 + $0x128] sm:$0xff]  ;;  %v85_v58 = vld [vmem:[#allocation3 + $0xd2] sm:$0xff] }
  0x1b   :  { %1207 = vmatpush.bf16.msra.mxu1 %v1762_v14  ;;  %v326_v25 = vld.sshfl [vmem:[#allocation1] sm:$0xff pattern:$0x73625140]  ;;  %v327_v26 = vld.sshfl [vmem:[#allocation1 + $0x8] sm:$0xff pattern:$0x73625140] }
  0x1c   :  { %1256 = vmatpush.bf16.msra.mxu2 %v1770_v15  ;;  %v328_v27 = vld.sshfl [vmem:[#allocation1 + $0x10] sm:$0xff pattern:$0x73625140]  ;;  %v1947_v28 = vld.sshfl [vmem:[#allocation1 + $0x18] sm:$0xff pattern:$0x73625140] }
  0x1d   :  { %333 = vst [vmem:[#allocation1] ss:$4 sm:$0xff] %v63_v22  ;;  %v1786_v50 = vld [vmem:[#allocation6 + $0x120] sm:$0xff]  ;;  %v79_v51 = vld [vmem:[#allocation3 + $0xa8] sm:$0xff]  ;;  %v1785_v60 = vld [vmem:[#allocation6 + $0x118] sm:$0xff] }
  0x1e   :  { %1159 = vmatpush.bf16.msra.mxu0 %v1753_v16  ;;  %1804 = vmatpush.bf16.msra.mxu3 %v1753_v16  ;;  %334 = vst [vmem:[#allocation1 + $0x1] ss:$4 sm:$0xff] %v65_v23  ;;  %v83_v53 = vld [vmem:[#allocation3 + $0xc4] sm:$0xff]  ;;  %v58_v61 = vld [vmem:[#allocation3 + $0x16] sm:$0x3f]  ;;  %v89_v3 = vld [vmem:[#allocation3 + $0xee] sm:$0xff] }
  0x1f   :  { %1208 = vmatpush.bf16.msra.mxu1 %v1761_v17  ;;  %335 = vst [vmem:[#allocation1 + $0x2] ss:$4 sm:$0xff] %v67_v24  ;;  %v56_v59 = vld [vmem:[#allocation3 + $0x8] sm:$0x3f]  ;;  %v1784_v63 = vld [vmem:[#allocation6 + $0x110] sm:$0xff]  ;;  %v87_v2 = vld [vmem:[#allocation3 + $0xe0] sm:$0xff] }
  0x20   :  { %1257 = vmatpush.bf16.msra.mxu2 %v1769_v18  ;;  %336 = vst [vmem:[#allocation1 + $0x3] ss:$4 sm:$0xff] %v69_v29  ;;  %v60_v62 = vld [vmem:[#allocation3 + $0x24] sm:$0x3f]  ;;  %v62_v0 = vld [vmem:[#allocation3 + $0x32] sm:$0x3f] }
  0x21   :  { %319 = vst [vmem:[#allocation1 + $0x20] ss:$4 sm:$0xff] %v56_v59  ;;  %v1783_v1 = vld [vmem:[#allocation6 + $0x108] sm:$0xff]  ;;  %v91_v4 = vld [vmem:[#allocation3 + $0xfc] sm:$0xff]  ;;  %v99_v23 = vld [vmem:[#allocation3 + $0x134] sm:$0xff] }
  0x22   :  { %1160 = vmatpush.bf16.msra.mxu0 %v1752_v19  ;;  %1805 = vmatpush.bf16.msra.mxu3 %v1752_v19  ;;  %321 = vst [vmem:[#allocation1 + $0x21] ss:$4 sm:$0xff] %v58_v61  ;;  %v93_v12 = vld [vmem:[#allocation3 + $0x10a] sm:$0xff]  ;;  %v1782_v13 = vld [vmem:[#allocation6 + $0x100] sm:$0xff]  ;;  %v113_v59 = vld [vmem:[#allocation3 + $0x196] sm:$0xff] }
  0x23   :  { %1209 = vmatpush.bf16.msra.mxu1 %v1760_v20  ;;  %323 = vst [vmem:[#allocation1 + $0x22] ss:$4 sm:$0xff] %v60_v62  ;;  %v64_v14 = vld [vmem:[#allocation3 + $0x40] sm:$0x3f]  ;;  %v66_v15 = vld [vmem:[#allocation3 + $0x4e] sm:$0x3f] }
  0x24   :  { %1258 = vmatpush.bf16.msra.mxu2 %v1768_v21  ;;  %325 = vst [vmem:[#allocation1 + $0x23] ss:$4 sm:$0xff] %v62_v0  ;;  %v68_v16 = vld [vmem:[#allocation3 + $0x5c] sm:$0x3f]  ;;  %v70_v20 = vld [vmem:[#allocation3 + $0x6a] sm:$0x3f] }
  0x25   :  { %v95_v21 = vld [vmem:[#allocation3 + $0x118] sm:$0xff]  ;;  %v97_v22 = vld [vmem:[#allocation3 + $0x126] sm:$0xff] }
  0x26   :  { %1161 = vmatpush.bf16.msra.mxu0 %v1751_v30  ;;  %1806 = vmatpush.bf16.msra.mxu3 %v1751_v30  ;;  %v101_v29 = vld [vmem:[#allocation3 + $0x142] sm:$0xff]  ;;  %v72_v30 = vld [vmem:[#allocation3 + $0x78] sm:$0x3f] }
  0x27   :  { %1210 = vmatpush.bf16.msra.mxu1 %v1759_v31  ;;  %v341_v41 = vld.sshfl [vmem:[#allocation1] sm:$0xff pattern:$0x73625140]  ;;  %v1949_v42 = vld.sshfl [vmem:[#allocation1 + $0x18] sm:$0xff pattern:$0x73625140] }
  0x28   :  { %1259 = vmatpush.bf16.msra.mxu2 %v1767_v32  ;;  %v670_v43 = vpack.c.bf16 %v341_v41, %v326_v25  ;;  %v342_v44 = vld.sshfl [vmem:[#allocation1 + $0x8] sm:$0xff pattern:$0x73625140]  ;;  %v343_v45 = vld.sshfl [vmem:[#allocation1 + $0x10] sm:$0xff pattern:$0x73625140] }
  0x29   :  { %v671_v46 = vpack.c.bf16 %v342_v44, %v327_v26  ;;  %v672_v47 = vpack.c.bf16 %v343_v45, %v328_v27  ;;  %348 = vst [vmem:[#allocation1] ss:$4 sm:$0xff] %v71_v38  ;;  %v74_v31 = vld [vmem:[#allocation3 + $0x86] sm:$0x3f]  ;;  %v103_v38 = vld [vmem:[#allocation3 + $0x150] sm:$0xff] }
  0x2a   :  { %1162 = vmatpush.bf16.msra.mxu0 %v1750_v33  ;;  %1807 = vmatpush.bf16.msra.mxu3 %v1750_v33  ;;  %349 = vst [vmem:[#allocation1 + $0x1] ss:$4 sm:$0xff] %v73_v39  ;;  %v105_v39 = vld [vmem:[#allocation3 + $0x15e] sm:$0xff] }
  0x2b   :  { %1211 = vmatpush.bf16.msra.mxu1 %v1758_v34  ;;  %350 = vst [vmem:[#allocation1 + $0x2] ss:$4 sm:$0xff] %v75_v40  ;;  %v330_v17 = vld.sshfl [vmem:[#allocation1 + $0x20] sm:$0xff pattern:$0x73625140]  ;;  %v107_v40 = vld [vmem:[#allocation3 + $0x16c] sm:$0xff] }
  0x2c   :  { %1260 = vmatpush.bf16.msra.mxu2 %v1766_v35  ;;  %351 = vst [vmem:[#allocation1 + $0x3] ss:$4 sm:$0xff] %v77_v48  ;;  %v1955_v18 = vld.sshfl [vmem:[#allocation1 + $0x28] sm:$0xff pattern:$0x73625140] }
  0x2d   :  { %1163 = vmatmul.bf16.vlgmr.msra.gmra.mxu0 %v670_v43  ;;  %v1957_v19 = vld.sshfl [vmem:[#allocation1 + $0x30] sm:$0xff pattern:$0x73625140] }
  0x2e   :  { %1351 = vmatpush.bf16.msrb.mxu0 %v1789_v36  ;;  %1212 = vmatmul.bf16.vlgmr.msra.gmra.mxu1 %v671_v46  ;;  %337 = vst [vmem:[#allocation1 + $0x20] ss:$4 sm:$0xff] %v64_v14  ;;  %v76_v36 = vld [vmem:[#allocation3 + $0x94] sm:$0x3f] }
  0x2f   :  { %1261 = vmatmul.bf16.vlgmr.msra.gmra.mxu2 %v672_v47  ;;  %338 = vst [vmem:[#allocation1 + $0x21] ss:$4 sm:$0xff] %v66_v15 }
  0x30   :  { %339 = vst [vmem:[#allocation1 + $0x22] ss:$4 sm:$0xff] %v68_v16 }
  0x31   :  { %340 = vst [vmem:[#allocation1 + $0x23] ss:$4 sm:$0xff] %v70_v20 }
  0x32   :  { %1352 = vmatpush.bf16.msrb.mxu0 %v1788_v37  ;;  %v78_v37 = vld [vmem:[#allocation3 + $0xa2] sm:$0x3f] }
  0x33   :  { %v356_v54 = vld.sshfl [vmem:[#allocation1] sm:$0xff pattern:$0x73625140]  ;;  %v357_v55 = vld.sshfl [vmem:[#allocation1 + $0x8] sm:$0xff pattern:$0x73625140] }
  0x34   :  { %v358_v56 = vld.sshfl [vmem:[#allocation1 + $0x10] sm:$0xff pattern:$0x73625140]  ;;  %v1951_v57 = vld.sshfl [vmem:[#allocation1 + $0x18] sm:$0xff pattern:$0x73625140] }
  0x35   :  { %363 = vst [vmem:[#allocation1] ss:$4 sm:$0xff] %v79_v51  ;;  %v82_v51 = vld [vmem:[#allocation3 + $0xbe] sm:$0x3f] }
  0x36   :  { %1353 = vmatpush.bf16.msrb.mxu0 %v1787_v49  ;;  %364 = vst [vmem:[#allocation1 + $0x1] ss:$4 sm:$0xff] %v81_v52  ;;  %v109_v49 = vld [vmem:[#allocation3 + $0x17a] sm:$0xff] }
  0x37   :  { %365 = vst [vmem:[#allocation1 + $0x2] ss:$4 sm:$0xff] %v83_v53 }
  0x38   :  { %366 = vst [vmem:[#allocation1 + $0x3] ss:$4 sm:$0xff] %v85_v58  ;;  %v345_v32 = vld.sshfl [vmem:[#allocation1 + $0x20] sm:$0xff pattern:$0x73625140]  ;;  %v111_v58 = vld [vmem:[#allocation3 + $0x188] sm:$0xff] }
  0x39   :  { %v1961_v33 = vld.sshfl [vmem:[#allocation1 + $0x28] sm:$0xff pattern:$0x73625140]  ;;  %v1963_v34 = vld.sshfl [vmem:[#allocation1 + $0x30] sm:$0xff pattern:$0x73625140]  ;;  %v674_v35 = vpack.c.bf16 %v345_v32, %v330_v17 }
  0x3a   :  { %1354 = vmatpush.bf16.msrb.mxu0 %v1786_v50  ;;  %352 = vst [vmem:[#allocation1 + $0x20] ss:$4 sm:$0xff] %v72_v30  ;;  %v80_v50 = vld [vmem:[#allocation3 + $0xb0] sm:$0x3f] }
  0x3b   :  { %353 = vst [vmem:[#allocation1 + $0x21] ss:$4 sm:$0xff] %v74_v31 }
  0x3c   :  { %354 = vst [vmem:[#allocation1 + $0x22] ss:$4 sm:$0xff] %v76_v36  ;;  %v133_v36 = vld [vmem:[#allocation3 + $0x222] sm:$0xff] }
  0x3d   :  { %355 = vst [vmem:[#allocation1 + $0x23] ss:$4 sm:$0xff] %v78_v37  ;;  %v98_v37 = vld [vmem:[#allocation3 + $0x12e] sm:$0x3f] }
  0x3e   :  { %1355 = vmatpush.bf16.msrb.mxu0 %v1785_v60  ;;  %v115_v60 = vld [vmem:[#allocation3 + $0x1a4] sm:$0xff] }
  0x3f   :  { %v371_v5 = vld.sshfl [vmem:[#allocation1] sm:$0xff pattern:$0x73625140]  ;;  %v1953_v6 = vld.sshfl [vmem:[#allocation1 + $0x18] sm:$0xff pattern:$0x73625140] }
  0x40   :  { %v677_v7 = vpack.c.bf16 %v371_v5, %v356_v54  ;;  %v372_v8 = vld.sshfl [vmem:[#allocation1 + $0x8] sm:$0xff pattern:$0x73625140]  ;;  %v373_v9 = vld.sshfl [vmem:[#allocation1 + $0x10] sm:$0xff pattern:$0x73625140] }
  0x41   :  { %v678_v10 = vpack.c.bf16 %v372_v8, %v357_v55  ;;  %v679_v11 = vpack.c.bf16 %v373_v9, %v358_v56  ;;  %378 = vst [vmem:[#allocation1] ss:$4 sm:$0xff] %v87_v2  ;;  %v84_v54 = vld [vmem:[#allocation3 + $0xcc] sm:$0x3f]  ;;  %v86_v56 = vld [vmem:[#allocation3 + $0xda] sm:$0x3f] }
  0x42   :  { %1356 = vmatpush.bf16.msrb.mxu0 %v1784_v63  ;;  %379 = vst [vmem:[#allocation1 + $0x1] ss:$4 sm:$0xff] %v89_v3  ;;  %v88_v2 = vld [vmem:[#allocation3 + $0xe8] sm:$0x3f]  ;;  %v90_v8 = vld [vmem:[#allocation3 + $0xf6] sm:$0x3f] }
  0x43   :  { %1168 = vmatmul.bf16.gmra.mxu0 %v677_v7  ;;  %1217 = vmatmul.bf16.gmra.mxu1 %v678_v10  ;;  %380 = vst [vmem:[#allocation1 + $0x2] ss:$4 sm:$0xff] %v91_v4  ;;  %v92_v9 = vld [vmem:[#allocation3 + $0x104] sm:$0x3f] }
  0x44   :  { %1266 = vmatmul.bf16.gmra.mxu2 %v679_v11  ;;  %381 = vst [vmem:[#allocation1 + $0x3] ss:$4 sm:$0xff] %v93_v12  ;;  %v360_v52 = vld.sshfl [vmem:[#allocation1 + $0x20] sm:$0xff pattern:$0x73625140]  ;;  %v119_v10 = vld [vmem:[#allocation3 + $0x1c0] sm:$0xff] }
  0x45   :  { %v1967_v53 = vld.sshfl [vmem:[#allocation1 + $0x28] sm:$0xff pattern:$0x73625140]  ;;  %v1969_v55 = vld.sshfl [vmem:[#allocation1 + $0x30] sm:$0xff pattern:$0x73625140] }
  0x46   :  { %1357 = vmatpush.bf16.msrb.mxu0 %v1783_v1  ;;  %367 = vst [vmem:[#allocation1 + $0x20] ss:$4 sm:$0xff] %v80_v50  ;;  %v117_v1 = vld [vmem:[#allocation3 + $0x1b2] sm:$0xff]  ;;  %v123_v12 = vld [vmem:[#allocation3 + $0x1dc] sm:$0xff] }
  0x47   :  { %368 = vst [vmem:[#allocation1 + $0x21] ss:$4 sm:$0xff] %v82_v51  ;;  %v121_v11 = vld [vmem:[#allocation3 + $0x1ce] sm:$0xff] }
  0x48   :  { %369 = vst [vmem:[#allocation1 + $0x22] ss:$4 sm:$0xff] %v84_v54 }
  0x49   :  { %370 = vst [vmem:[#allocation1 + $0x23] ss:$4 sm:$0xff] %v86_v56 }
  0x4a   :  { %1358 = vmatpush.bf16.msrb.mxu0 %v1782_v13 }
  0x4b   :  { %v386_v24 = vld.sshfl [vmem:[#allocation1] sm:$0xff pattern:$0x73625140]  ;;  %v387_v25 = vld.sshfl [vmem:[#allocation1 + $0x8] sm:$0xff pattern:$0x73625140] }
  0x4c   :  { %v388_v26 = vld.sshfl [vmem:[#allocation1 + $0x10] sm:$0xff pattern:$0x73625140]  ;;  %v1959_v27 = vld.sshfl [vmem:[#allocation1 + $0x18] sm:$0xff pattern:$0x73625140] }
  0x4d   :  { %393 = vst [vmem:[#allocation1] ss:$4 sm:$0xff] %v95_v21 }
  0x4e   :  { %394 = vst [vmem:[#allocation1 + $0x1] ss:$4 sm:$0xff] %v97_v22  ;;  %v125_v22 = vld [vmem:[#allocation3 + $0x1ea] sm:$0xff] }
  0x4f   :  { %395 = vst [vmem:[#allocation1 + $0x2] ss:$4 sm:$0xff] %v99_v23  ;;  %v94_v23 = vld [vmem:[#allocation3 + $0x112] sm:$0x3f] }
  0x50   :  { %396 = vst [vmem:[#allocation1 + $0x3] ss:$4 sm:$0xff] %v101_v29  ;;  %v375_v3 = vld.sshfl [vmem:[#allocation1 + $0x20] sm:$0xff pattern:$0x73625140] }
  0x51   :  { %v1973_v4 = vld.sshfl [vmem:[#allocation1 + $0x28] sm:$0xff pattern:$0x73625140]  ;;  %v1975_v5 = vld.sshfl [vmem:[#allocation1 + $0x30] sm:$0xff pattern:$0x73625140]  ;;  %v681_v7 = vpack.c.bf16 %v375_v3, %v360_v52 }
  0x52   :  { %382 = vst [vmem:[#allocation1 + $0x20] ss:$4 sm:$0xff] %v88_v2 }
  0x53   :  { %1359 = vmatmul.bf16.vlgmr.msrb.gmra.mxu0 %v674_v35  ;;  %383 = vst [vmem:[#allocation1 + $0x21] ss:$4 sm:$0xff] %v90_v8  ;;  %v96_v35 = vld [vmem:[#allocation3 + $0x120] sm:$0x3f] }
  0x54   :  { %384 = vst [vmem:[#allocation1 + $0x22] ss:$4 sm:$0xff] %v92_v9  ;;  %v110_v8 = vld [vmem:[#allocation3 + $0x182] sm:$0x3f]  ;;  %v143_v9 = vld [vmem:[#allocation3 + $0x268] sm:$0xff] }
  0x55   :  { %385 = vst [vmem:[#allocation1 + $0x23] ss:$4 sm:$0xff] %v94_v23 }
  0x57   :  { %v401_v41 = vld.sshfl [vmem:[#allocation1] sm:$0xff pattern:$0x73625140]  ;;  %v1965_v43 = vld.sshfl [vmem:[#allocation1 + $0x18] sm:$0xff pattern:$0x73625140] }
  0x58   :  { %v684_v44 = vpack.c.bf16 %v401_v41, %v386_v24  ;;  %v402_v45 = vld.sshfl [vmem:[#allocation1 + $0x8] sm:$0xff pattern:$0x73625140]  ;;  %v403_v46 = vld.sshfl [vmem:[#allocation1 + $0x10] sm:$0xff pattern:$0x73625140] }
  0x59   :  { %v685_v47 = vpack.c.bf16 %v402_v45, %v387_v25  ;;  %v686_v48 = vpack.c.bf16 %v403_v46, %v388_v26  ;;  %408 = vst [vmem:[#allocation1] ss:$4 sm:$0xff] %v103_v38  ;;  %v127_v24 = vld [vmem:[#allocation3 + $0x1f8] sm:$0xff]  ;;  %v129_v25 = vld [vmem:[#allocation3 + $0x206] sm:$0xff] }
  0x5a   :  { %1173 = vmatmul.bf16.vlgmr.msra.gmra.mxu3 %v684_v44  ;;  %409 = vst [vmem:[#allocation1 + $0x1] ss:$4 sm:$0xff] %v105_v39  ;;  %v131_v26 = vld [vmem:[#allocation3 + $0x214] sm:$0xff]  ;;  %v100_v41 = vld [vmem:[#allocation3 + $0x13c] sm:$0x3f]  ;;  %v1985_v45 = vld [vmem:[#allocation6 + $0x188] sm:$0xff] }
  0x5b   :  { %1222 = vmatmul.bf16.gmra.mxu1 %v685_v47  ;;  %1271 = vmatmul.bf16.gmra.mxu2 %v686_v48  ;;  %410 = vst [vmem:[#allocation1 + $0x2] ss:$4 sm:$0xff] %v107_v40  ;;  %v102_v44 = vld [vmem:[#allocation3 + $0x14a] sm:$0x3f]  ;;  %v1797_v46 = vld [vmem:[#allocation6 + $0x178] sm:$0xff]  ;;  %v135_v47 = vld [vmem:[#allocation3 + $0x230] sm:$0xff] }
  0x5c   :  { %411 = vst [vmem:[#allocation1 + $0x3] ss:$4 sm:$0xff] %v109_v49  ;;  %v390_v38 = vld.sshfl [vmem:[#allocation1 + $0x20] sm:$0xff pattern:$0x73625140]  ;;  %1816 = vmatpush.bf16.msrb.mxu2 %v1985_v45  ;;  %1808 = vmatpush.bf16.msrb.mxu1 %v1797_v46 }
  0x5d   :  { %v1981_v39 = vld.sshfl [vmem:[#allocation1 + $0x28] sm:$0xff pattern:$0x73625140]  ;;  %v1983_v40 = vld.sshfl [vmem:[#allocation1 + $0x30] sm:$0xff pattern:$0x73625140]  ;;  %1400 = vmatpush.bf16.msra.mxu0 %v1797_v46 }
  0x5e   :  { %397 = vst [vmem:[#allocation1 + $0x20] ss:$4 sm:$0xff] %v96_v35  ;;  %v137_v48 = vld [vmem:[#allocation3 + $0x23e] sm:$0xff] }
  0x5f   :  { %398 = vst [vmem:[#allocation1 + $0x21] ss:$4 sm:$0xff] %v98_v37  ;;  %v151_v35 = vld [vmem:[#allocation3 + $0x2a0] sm:$0xff] }
  0x60   :  { %399 = vst [vmem:[#allocation1 + $0x22] ss:$4 sm:$0xff] %v100_v41  ;;  %v155_v37 = vld [vmem:[#allocation3 + $0x2bc] sm:$0xff] }
  0x61   :  { %400 = vst [vmem:[#allocation1 + $0x23] ss:$4 sm:$0xff] %v102_v44 }
  0x63   :  { %v416_v61 = vld.sshfl [vmem:[#allocation1] sm:$0xff pattern:$0x73625140]  ;;  %v417_v62 = vld.sshfl [vmem:[#allocation1 + $0x8] sm:$0xff pattern:$0x73625140]  ;;  %1364 = vmatmul.bf16.gmra.mxu0 %v681_v7 }
  0x64   :  { %v418_v63 = vld.sshfl [vmem:[#allocation1 + $0x10] sm:$0xff pattern:$0x73625140]  ;;  %v1971_v0 = vld.sshfl [vmem:[#allocation1 + $0x18] sm:$0xff pattern:$0x73625140] }
  0x65   :  { %423 = vst [vmem:[#allocation1] ss:$4 sm:$0xff] %v111_v58  ;;  %v108_v7 = vld [vmem:[#allocation3 + $0x174] sm:$0x3f] }
  0x66   :  { %424 = vst [vmem:[#allocation1 + $0x1] ss:$4 sm:$0xff] %v113_v59  ;;  %v139_v59 = vld [vmem:[#allocation3 + $0x24c] sm:$0xff] }
  0x67   :  { %425 = vst [vmem:[#allocation1 + $0x2] ss:$4 sm:$0xff] %v115_v60  ;;  %v141_v60 = vld [vmem:[#allocation3 + $0x25a] sm:$0xff] }
  0x68   :  { %426 = vst [vmem:[#allocation1 + $0x3] ss:$4 sm:$0xff] %v117_v1  ;;  %v1990_v1 = vld.sshfl [vmem:[#allocation1 + $0x28] sm:$0xff pattern:$0x73625140] }
  0x69   :  { %v1992_v2 = vld.sshfl [vmem:[#allocation1 + $0x30] sm:$0xff pattern:$0x73625140] }
  0x6f   :  { %v431_v13 = vld.sshfl [vmem:[#allocation1] sm:$0xff pattern:$0x73625140]  ;;  %v1977_v14 = vld.sshfl [vmem:[#allocation1 + $0x18] sm:$0xff pattern:$0x73625140] }
  0x70   :  { %v691_v15 = vpack.c.bf16 %v431_v13, %v416_v61  ;;  %v432_v16 = vld.sshfl [vmem:[#allocation1 + $0x8] sm:$0xff pattern:$0x73625140]  ;;  %v433_v17 = vld.sshfl [vmem:[#allocation1 + $0x10] sm:$0xff pattern:$0x73625140] }
  0x71   :  { %v692_v20 = vpack.c.bf16 %v432_v16, %v417_v62  ;;  %v693_v21 = vpack.c.bf16 %v433_v17, %v418_v63  ;;  %438 = vst [vmem:[#allocation1] ss:$4 sm:$0xff] %v119_v10  ;;  %v104_v61 = vld [vmem:[#allocation3 + $0x158] sm:$0x3f]  ;;  %v106_v62 = vld [vmem:[#allocation3 + $0x166] sm:$0x3f] }
  0x72   :  { %1178 = vmatmul.bf16.gmra.mxu3 %v691_v15  ;;  %439 = vst [vmem:[#allocation1 + $0x1] ss:$4 sm:$0xff] %v121_v11  ;;  %v405_v63 = vld.sshfl [vmem:[#allocation1 + $0x20] sm:$0xff pattern:$0x73625140]  ;;  %v147_v11 = vld [vmem:[#allocation3 + $0x284] sm:$0xff] }
  0x73   :  { %1227 = vmatmul.bf16.gmra.mxu1 %v692_v20  ;;  %1276 = vmatmul.bf16.gmra.mxu2 %v693_v21  ;;  %440 = vst [vmem:[#allocation1 + $0x2] ss:$4 sm:$0xff] %v123_v12  ;;  %v688_v3 = vpack.c.bf16 %v405_v63, %v390_v38  ;;  %v145_v10 = vld [vmem:[#allocation3 + $0x276] sm:$0xff]  ;;  %v112_v20 = vld [vmem:[#allocation3 + $0x190] sm:$0x3f]  ;;  %v1779_v38 = vld [vmem:[#allocation6 + $0xe8] sm:$0xff] }
  0x74   :  { %441 = vst [vmem:[#allocation1 + $0x3] ss:$4 sm:$0xff] %v125_v22  ;;  %v149_v17 = vld [vmem:[#allocation3 + $0x292] sm:$0xff]  ;;  %v114_v21 = vld [vmem:[#allocation3 + $0x19e] sm:$0x3f] }
  0x75   :  { %1369 = vmatmul.bf16.gmra.mxu0 %v688_v3  ;;  %412 = vst [vmem:[#allocation1 + $0x20] ss:$4 sm:$0xff] %v104_v61  ;;  %v126_v3 = vld [vmem:[#allocation3 + $0x1f2] sm:$0x3f] }
  0x76   :  { %413 = vst [vmem:[#allocation1 + $0x21] ss:$4 sm:$0xff] %v106_v62 }
  0x77   :  { %414 = vst [vmem:[#allocation1 + $0x22] ss:$4 sm:$0xff] %v108_v7  ;;  %v159_v7 = vld [vmem:[#allocation3 + $0x2d8] sm:$0xff] }
  0x78   :  { %415 = vst [vmem:[#allocation1 + $0x23] ss:$4 sm:$0xff] %v110_v8  ;;  %v161_v8 = vld [vmem:[#allocation3 + $0x2e6] sm:$0xff] }
  0x7b   :  { %v446_v29 = vld.sshfl [vmem:[#allocation1] sm:$0xff pattern:$0x73625140]  ;;  %v447_v30 = vld.sshfl [vmem:[#allocation1 + $0x8] sm:$0xff pattern:$0x73625140] }
  0x7c   :  { %v448_v31 = vld.sshfl [vmem:[#allocation1 + $0x10] sm:$0xff pattern:$0x73625140]  ;;  %v1979_v32 = vld.sshfl [vmem:[#allocation1 + $0x18] sm:$0xff pattern:$0x73625140] }
  0x7d   :  { %453 = vst [vmem:[#allocation1] ss:$4 sm:$0xff] %v127_v24  ;;  %v116_v24 = vld [vmem:[#allocation3 + $0x1ac] sm:$0x3f] }
  0x7e   :  { %454 = vst [vmem:[#allocation1 + $0x1] ss:$4 sm:$0xff] %v129_v25 }
  0x7f   :  { %455 = vst [vmem:[#allocation1 + $0x2] ss:$4 sm:$0xff] %v131_v26  ;;  %v420_v22 = vld.sshfl [vmem:[#allocation1 + $0x20] sm:$0xff pattern:$0x73625140] }
  0x80   :  { %456 = vst [vmem:[#allocation1 + $0x3] ss:$4 sm:$0xff] %v133_v36  ;;  %v1996_v23 = vld.sshfl [vmem:[#allocation1 + $0x28] sm:$0xff pattern:$0x73625140]  ;;  %v153_v36 = vld [vmem:[#allocation3 + $0x2ae] sm:$0xff] }
  0x81   :  { %v1998_v25 = vld.sshfl [vmem:[#allocation1 + $0x30] sm:$0xff pattern:$0x73625140]  ;;  %v118_v26 = vld [vmem:[#allocation3 + $0x1ba] sm:$0x3f] }
  0x82   :  { %427 = vst [vmem:[#allocation1 + $0x20] ss:$4 sm:$0xff] %v112_v20  ;;  %v130_v20 = vld [vmem:[#allocation3 + $0x20e] sm:$0x3f] }
  0x83   :  { %428 = vst [vmem:[#allocation1 + $0x21] ss:$4 sm:$0xff] %v114_v21 }
  0x84   :  { %429 = vst [vmem:[#allocation1 + $0x22] ss:$4 sm:$0xff] %v116_v24  ;;  %v132_v24 = vld [vmem:[#allocation3 + $0x21c] sm:$0x3f] }
  0x85   :  { %430 = vst [vmem:[#allocation1 + $0x23] ss:$4 sm:$0xff] %v118_v26 }
  0x87   :  { %v461_v49 = vld.sshfl [vmem:[#allocation1] sm:$0xff pattern:$0x73625140]  ;;  %v1988_v50 = vld.sshfl [vmem:[#allocation1 + $0x18] sm:$0xff pattern:$0x73625140] }
  0x88   :  { %v698_v51 = vpack.c.bf16 %v461_v49, %v446_v29  ;;  %v462_v52 = vld.sshfl [vmem:[#allocation1 + $0x8] sm:$0xff pattern:$0x73625140]  ;;  %v463_v54 = vld.sshfl [vmem:[#allocation1 + $0x10] sm:$0xff pattern:$0x73625140] }
  0x89   :  { %v699_v56 = vpack.c.bf16 %v462_v52, %v447_v30  ;;  %v700_v58 = vpack.c.bf16 %v463_v54, %v448_v31  ;;  %468 = vst [vmem:[#allocation1] ss:$4 sm:$0xff] %v135_v47  ;;  %v1781_v29 = vld [vmem:[#allocation6 + $0xf8] sm:$0xff]  ;;  %v1796_v30 = vld [vmem:[#allocation6 + $0x170] sm:$0xff]  ;;  %v120_v54 = vld [vmem:[#allocation3 + $0x1c8] sm:$0x3f] }
  0x8a   :  { %1183 = vmatmul.bf16.gmra.mxu3 %v698_v51  ;;  %469 = vst [vmem:[#allocation1 + $0x1] ss:$4 sm:$0xff] %v137_v48  ;;  %v1780_v31 = vld [vmem:[#allocation6 + $0xf0] sm:$0xff]  ;;  %1809 = vmatpush.bf16.msrb.mxu1 %v1796_v30 }
  0x8b   :  { %1232 = vmatmul.bf16.gmra.mxu1 %v699_v56  ;;  %1281 = vmatmul.bf16.gmra.mxu2 %v700_v58  ;;  %470 = vst [vmem:[#allocation1 + $0x2] ss:$4 sm:$0xff] %v139_v59  ;;  %v157_v52 = vld [vmem:[#allocation3 + $0x2ca] sm:$0xff]  ;;  %v122_v56 = vld [vmem:[#allocation3 + $0x1d6] sm:$0x3f]  ;;  %v1778_v58 = vld [vmem:[#allocation6 + $0xe0] sm:$0xff] }
  0x8c   :  { %471 = vst [vmem:[#allocation1 + $0x3] ss:$4 sm:$0xff] %v141_v60  ;;  %1302 = vmatpush.bf16.msrb.mxu3 %v1781_v29  ;;  %1401 = vmatpush.bf16.msra.mxu0 %v1796_v30  ;;  %v124_v59 = vld [vmem:[#allocation3 + $0x1e4] sm:$0x3f]  ;;  %v134_v29 = vld [vmem:[#allocation3 + $0x22a] sm:$0x3f] }
  0x8d   :  { %v435_v60 = vld.sshfl [vmem:[#allocation1 + $0x20] sm:$0xff pattern:$0x73625140]  ;;  %v2002_v61 = vld.sshfl [vmem:[#allocation1 + $0x28] sm:$0xff pattern:$0x73625140] }
  0x8e   :  { %v2004_v62 = vld.sshfl [vmem:[#allocation1 + $0x30] sm:$0xff pattern:$0x73625140]  ;;  %v695_v63 = vpack.c.bf16 %v435_v60, %v420_v22  ;;  %v1777_v30 = vld [vmem:[#allocation6 + $0xd8] sm:$0xff] }
  0x8f   :  { %442 = vst [vmem:[#allocation1 + $0x20] ss:$4 sm:$0xff] %v120_v54  ;;  %v138_v60 = vld [vmem:[#allocation3 + $0x246] sm:$0x3f] }
  0x90   :  { %1303 = vmatpush.bf16.msrb.mxu3 %v1780_v31  ;;  %1374 = vmatmul.bf16.gmra.mxu0 %v695_v63  ;;  %443 = vst [vmem:[#allocation1 + $0x21] ss:$4 sm:$0xff] %v122_v56  ;;  %v1795_v31 = vld [vmem:[#allocation6 + $0x168] sm:$0xff]  ;;  %v173_v56 = vld [vmem:[#allocation3 + $0x33a] sm:$0xff] }
  0x91   :  { %444 = vst [vmem:[#allocation1 + $0x22] ss:$4 sm:$0xff] %v124_v59  ;;  %1810 = vmatpush.bf16.msrb.mxu1 %v1795_v31  ;;  %1402 = vmatpush.bf16.msra.mxu0 %v1795_v31  ;;  %v136_v59 = vld [vmem:[#allocation3 + $0x238] sm:$0x3f]  ;;  %v1774_v63 = vld [vmem:[#allocation6 + $0xc0] sm:$0xff] }
  0x92   :  { %445 = vst [vmem:[#allocation1 + $0x23] ss:$4 sm:$0xff] %v126_v3  ;;  %v140_v3 = vld [vmem:[#allocation3 + $0x254] sm:$0x3f] }
  0x93   :  { %v476_v12 = vld.sshfl [vmem:[#allocation1] sm:$0xff pattern:$0x73625140]  ;;  %v477_v13 = vld.sshfl [vmem:[#allocation1 + $0x8] sm:$0xff pattern:$0x73625140] }
  0x94   :  { %v478_v15 = vld.sshfl [vmem:[#allocation1 + $0x10] sm:$0xff pattern:$0x73625140]  ;;  %v1994_v16 = vld.sshfl [vmem:[#allocation1 + $0x18] sm:$0xff pattern:$0x73625140]  ;;  %1304 = vmatpush.bf16.msrb.mxu3 %v1779_v38 }
  0x95   :  { %483 = vst [vmem:[#allocation1] ss:$4 sm:$0xff] %v143_v9  ;;  %v163_v9 = vld [vmem:[#allocation3 + $0x2f4] sm:$0xff]  ;;  %v171_v38 = vld [vmem:[#allocation3 + $0x32c] sm:$0xff] }
  0x96   :  { %484 = vst [vmem:[#allocation1 + $0x1] ss:$4 sm:$0xff] %v145_v10 }
  0x97   :  { %485 = vst [vmem:[#allocation1 + $0x2] ss:$4 sm:$0xff] %v147_v11 }
  0x98   :  { %486 = vst [vmem:[#allocation1 + $0x3] ss:$4 sm:$0xff] %v149_v17  ;;  %1305 = vmatpush.bf16.msrb.mxu3 %v1778_v58  ;;  %v128_v17 = vld [vmem:[#allocation3 + $0x200] sm:$0x3f] }
  0x99   :  { %v450_v21 = vld.sshfl [vmem:[#allocation1 + $0x20] sm:$0xff pattern:$0x73625140]  ;;  %v2008_v22 = vld.sshfl [vmem:[#allocation1 + $0x28] sm:$0xff pattern:$0x73625140] }
  0x9a   :  { %v2010_v26 = vld.sshfl [vmem:[#allocation1 + $0x30] sm:$0xff pattern:$0x73625140]  ;;  %v1794_v58 = vld [vmem:[#allocation6 + $0x160] sm:$0xff] }
  0x9b   :  { %457 = vst [vmem:[#allocation1 + $0x20] ss:$4 sm:$0xff] %v128_v17  ;;  %1811 = vmatpush.bf16.msrb.mxu1 %v1794_v58  ;;  %1403 = vmatpush.bf16.msra.mxu0 %v1794_v58  ;;  %v179_v17 = vld [vmem:[#allocation3 + $0x364] sm:$0xff] }
  0x9c   :  { %458 = vst [vmem:[#allocation1 + $0x21] ss:$4 sm:$0xff] %v130_v20  ;;  %1306 = vmatpush.bf16.msrb.mxu3 %v1777_v30  ;;  %v1793_v20 = vld [vmem:[#allocation6 + $0x158] sm:$0xff] }
  0x9d   :  { %459 = vst [vmem:[#allocation1 + $0x22] ss:$4 sm:$0xff] %v132_v24  ;;  %v1792_v24 = vld [vmem:[#allocation6 + $0x150] sm:$0xff] }
  0x9e   :  { %460 = vst [vmem:[#allocation1 + $0x23] ss:$4 sm:$0xff] %v134_v29 }
  0x9f   :  { %v491_v41 = vld.sshfl [vmem:[#allocation1] sm:$0xff pattern:$0x73625140]  ;;  %v2000_v44 = vld.sshfl [vmem:[#allocation1 + $0x18] sm:$0xff pattern:$0x73625140]  ;;  %1812 = vmatpush.bf16.msrb.mxu1 %v1793_v20  ;;  %1404 = vmatpush.bf16.msra.mxu0 %v1793_v20 }
  0xa0   :  { %v705_v46 = vpack.c.bf16 %v491_v41, %v476_v12  ;;  %v492_v47 = vld.sshfl [vmem:[#allocation1 + $0x8] sm:$0xff pattern:$0x73625140]  ;;  %v493_v48 = vld.sshfl [vmem:[#allocation1 + $0x10] sm:$0xff pattern:$0x73625140] }
  0xa1   :  { %v706_v49 = vpack.c.bf16 %v492_v47, %v477_v13  ;;  %v707_v51 = vpack.c.bf16 %v493_v48, %v478_v15  ;;  %498 = vst [vmem:[#allocation1] ss:$4 sm:$0xff] %v151_v35  ;;  %v165_v15 = vld [vmem:[#allocation3 + $0x302] sm:$0xff]  ;;  %v1776_v35 = vld [vmem:[#allocation6 + $0xd0] sm:$0xff] }
  0xa2   :  { %1188 = vmatmul.bf16.gmra.mxu3 %v705_v46  ;;  %499 = vst [vmem:[#allocation1 + $0x1] ss:$4 sm:$0xff] %v153_v36  ;;  %v167_v36 = vld [vmem:[#allocation3 + $0x310] sm:$0xff]  ;;  %v1775_v41 = vld [vmem:[#allocation6 + $0xc8] sm:$0xff] }
  0xa3   :  { %1237 = vmatmul.bf16.gmra.mxu1 %v706_v49  ;;  %1286 = vmatmul.bf16.gmra.mxu2 %v707_v51  ;;  %500 = vst [vmem:[#allocation1 + $0x2] ss:$4 sm:$0xff] %v155_v37  ;;  %v169_v37 = vld [vmem:[#allocation3 + $0x31e] sm:$0xff] }
  0xa4   :  { %501 = vst [vmem:[#allocation1 + $0x3] ss:$4 sm:$0xff] %v157_v52  ;;  %1307 = vmatpush.bf16.msrb.mxu3 %v1776_v35  ;;  %1813 = vmatpush.bf16.msrb.mxu1 %v1792_v24 }
  0xa5   :  { %1405 = vmatpush.bf16.msra.mxu0 %v1792_v24  ;;  %v152_v24 = vld [vmem:[#allocation3 + $0x2a8] sm:$0x3f] }
  0xa8   :  { %1308 = vmatpush.bf16.msrb.mxu3 %v1775_v41  ;;  %v146_v41 = vld [vmem:[#allocation3 + $0x27e] sm:$0x3f] }
  0xab   :  { %v506_v10 = vld.sshfl [vmem:[#allocation1] sm:$0xff pattern:$0x73625140]  ;;  %v507_v11 = vld.sshfl [vmem:[#allocation1 + $0x8] sm:$0xff pattern:$0x73625140] }
  0xac   :  { %v508_v12 = vld.sshfl [vmem:[#allocation1 + $0x10] sm:$0xff pattern:$0x73625140]  ;;  %v2006_v13 = vld.sshfl [vmem:[#allocation1 + $0x18] sm:$0xff pattern:$0x73625140]  ;;  %1309 = vmatpush.bf16.msrb.mxu3 %v1774_v63 }
  0xad   :  { %513 = vst [vmem:[#allocation1] ss:$4 sm:$0xff] %v159_v7  ;;  %v465_v7 = vld.sshfl [vmem:[#allocation1 + $0x20] sm:$0xff pattern:$0x73625140] }
  0xae   :  { %514 = vst [vmem:[#allocation1 + $0x1] ss:$4 sm:$0xff] %v161_v8  ;;  %v2014_v8 = vld.sshfl [vmem:[#allocation1 + $0x28] sm:$0xff pattern:$0x73625140] }
  0xaf   :  { %515 = vst [vmem:[#allocation1 + $0x2] ss:$4 sm:$0xff] %v163_v9  ;;  %v2016_v9 = vld.sshfl [vmem:[#allocation1 + $0x30] sm:$0xff pattern:$0x73625140] }
  0xb0   :  { %516 = vst [vmem:[#allocation1 + $0x3] ss:$4 sm:$0xff] %v165_v15  ;;  %v177_v15 = vld [vmem:[#allocation3 + $0x356] sm:$0xff] }
  0xb1   :  { %472 = vst [vmem:[#allocation1 + $0x20] ss:$4 sm:$0xff] %v136_v59 }
  0xb2   :  { %473 = vst [vmem:[#allocation1 + $0x21] ss:$4 sm:$0xff] %v138_v60  ;;  %v150_v60 = vld [vmem:[#allocation3 + $0x29a] sm:$0x3f] }
  0xb3   :  { %474 = vst [vmem:[#allocation1 + $0x22] ss:$4 sm:$0xff] %v140_v3 }
  0xb7   :  { %v521_v46 = vld.sshfl [vmem:[#allocation1] sm:$0xff pattern:$0x73625140]  ;;  %v2012_v47 = vld.sshfl [vmem:[#allocation1 + $0x18] sm:$0xff pattern:$0x73625140] }
  0xb8   :  { %v712_v48 = vpack.c.bf16 %v521_v46, %v506_v10  ;;  %v522_v49 = vld.sshfl [vmem:[#allocation1 + $0x8] sm:$0xff pattern:$0x73625140]  ;;  %v523_v51 = vld.sshfl [vmem:[#allocation1 + $0x10] sm:$0xff pattern:$0x73625140]  ;;  %v702_v10 = vpack.c.bf16 %v465_v7, %v450_v21  ;;  %v1164_v46 = vpop.f32.mrf.mxu0 }
  0xb9   :  { %v713_v52 = vpack.c.bf16 %v522_v49, %v507_v11  ;;  %v714_v54 = vpack.c.bf16 %v523_v51, %v508_v12  ;;  %528 = vst [vmem:[#allocation1] ss:$4 sm:$0xff] %v167_v36  ;;  %v142_v11 = vld [vmem:[#allocation3 + $0x262] sm:$0x3f]  ;;  %v175_v12 = vld [vmem:[#allocation3 + $0x348] sm:$0xff]  ;;  %v181_v21 = vld [vmem:[#allocation3 + $0x372] sm:$0xff] }
  0xba   :  { %1193 = vmatmul.bf16.gmra.mxu3 %v712_v48  ;;  %529 = vst [vmem:[#allocation1 + $0x1] ss:$4 sm:$0xff] %v169_v37  ;;  %1379 = vmatmul.bf16.gmra.mxu0 %v702_v10  ;;  %v2023_v36 = vld [vmem:[%s2273_s2] ss:$0 sm:$0xff]  ;;  %v1798_v37 = vld [vmem:[#allocation6 + $0x180] sm:$0xff] }
  0xbb   :  { %1242 = vmatmul.bf16.gmra.mxu1 %v713_v52  ;;  %1291 = vmatmul.bf16.gmra.mxu2 %v714_v54  ;;  %530 = vst [vmem:[#allocation1 + $0x2] ss:$4 sm:$0xff] %v171_v38  ;;  %v144_v38 = vld [vmem:[#allocation3 + $0x270] sm:$0x3f]  ;;  %v1165_v49 = vadd.f32 %v2023_v36, %v1164_v46  ;;  %v1791_v52 = vld [vmem:[#allocation6 + $0x148] sm:$0xff]  ;;  %v1213_v54 = vpop.f32.mrf.mxu1 }
  0xbc   :  { %531 = vst [vmem:[#allocation1 + $0x3] ss:$4 sm:$0xff] %v173_v56  ;;  %1817 = vmatpush.bf16.msrb.mxu2 %v1798_v37  ;;  %v148_v56 = vld [vmem:[#allocation3 + $0x28c] sm:$0x3f]  ;;  %1814 = vmatpush.bf16.msrb.mxu1 %v1791_v52 }
  0xbd   :  { %475 = vst [vmem:[#allocation1 + $0x23] ss:$4 sm:$0xff] %v142_v11  ;;  %v1214_v59 = vadd.f32 %v1213_v54, %v1165_v49  ;;  %1406 = vmatpush.bf16.msra.mxu0 %v1791_v52  ;;  %v158_v52 = vld [vmem:[#allocation3 + $0x2d2] sm:$0x3f] }
  0xc0   :  { %v2030_v20 = vpop.f32.mrf.mxu0 }
  0xc3   :  { %v536_v29 = vld.sshfl [vmem:[#allocation1] sm:$0xff pattern:$0x73625140]  ;;  %v537_v30 = vld.sshfl [vmem:[#allocation1 + $0x8] sm:$0xff pattern:$0x73625140] }
  0xc4   :  { %v538_v31 = vld.sshfl [vmem:[#allocation1 + $0x10] sm:$0xff pattern:$0x73625140]  ;;  %v2018_v35 = vld.sshfl [vmem:[#allocation1 + $0x18] sm:$0xff pattern:$0x73625140] }
  0xc5   :  { %543 = vst [vmem:[#allocation1] ss:$4 sm:$0xff] %v175_v12  ;;  %v480_v48 = vld.sshfl [vmem:[#allocation1 + $0x20] sm:$0xff pattern:$0x73625140]  ;;  %v1790_v12 = vld [vmem:[#allocation6 + $0x140] sm:$0xff] }
  0xc6   :  { %544 = vst [vmem:[#allocation1 + $0x1] ss:$4 sm:$0xff] %v177_v15  ;;  %v2026_v51 = vld.sshfl [vmem:[#allocation1 + $0x28] sm:$0xff pattern:$0x73625140]  ;;  %1815 = vmatpush.bf16.msrb.mxu1 %v1790_v12  ;;  %1407 = vmatpush.bf16.msra.mxu0 %v1790_v12 }
  0xc7   :  { %545 = vst [vmem:[#allocation1 + $0x2] ss:$4 sm:$0xff] %v179_v17  ;;  %v2028_v58 = vld.sshfl [vmem:[#allocation1 + $0x30] sm:$0xff pattern:$0x73625140]  ;;  %v1262_v17 = vpop.f32.mrf.mxu2 }
  0xc8   :  { %546 = vst [vmem:[#allocation1 + $0x3] ss:$4 sm:$0xff] %v181_v21  ;;  %v154_v21 = vld [vmem:[#allocation3 + $0x2b6] sm:$0x3f]  ;;  %v1169_v54 = vpop.f32.mrf.mxu0  ;;  %v164_v12 = vld [vmem:[#allocation3 + $0x2fc] sm:$0x3f] }
  0xc9   :  { %487 = vst [vmem:[#allocation1 + $0x20] ss:$4 sm:$0xff] %v144_v38  ;;  %v2032_v38 = vadd.f32 %v1262_v17, %v1214_v59  ;;  %v166_v17 = vld [vmem:[#allocation3 + $0x30a] sm:$0x3f] }
  0xca   :  { %488 = vst [vmem:[#allocation1 + $0x21] ss:$4 sm:$0xff] %v146_v41  ;;  %v2034_v41 = vpop.f32.mrf.mxu1  ;;  %1455 = vmatpush.bf16.msrb.mxu0 %v1985_v45  ;;  %v682_v45 = vpack.c.bf16 %v1973_v4, %v1967_v53  ;;  %v168_v4 = vld [vmem:[#allocation3 + $0x318] sm:$0x3f] }
  0xcb   :  { %489 = vst [vmem:[#allocation1 + $0x22] ss:$4 sm:$0xff] %v148_v56  ;;  %v1170_v56 = vadd.f32 %v2023_v36, %v1169_v54  ;;  %v680_v54 = vpack.c.bf16 %v1953_v6, %v1951_v57  ;;  %v176_v6 = vld [vmem:[#allocation3 + $0x350] sm:$0x3f] }
  0xcc   :  { %490 = vst [vmem:[#allocation1 + $0x23] ss:$4 sm:$0xff] %v150_v60 }
  0xce   :  { %1456 = vmatpush.bf16.msrb.mxu0 %v1798_v37 }
  0xcf   :  { %v551_v63 = vld.sshfl [vmem:[#allocation1] sm:$0xff pattern:$0x73625140]  ;;  %v552_v3 = vld.sshfl [vmem:[#allocation1 + $0x8] sm:$0xff pattern:$0x73625140]  ;;  %v2042_v60 = vpop.f32.mrf.mxu2 }
  0xd0   :  { %v719_v7 = vpack.c.bf16 %v551_v63, %v536_v29  ;;  %v720_v10 = vpack.c.bf16 %v552_v3, %v537_v30  ;;  %v553_v11 = vld.sshfl [vmem:[#allocation1 + $0x10] sm:$0xff pattern:$0x73625140]  ;;  %v160_v3 = vld [vmem:[#allocation3 + $0x2e0] sm:$0x3f] }
  0xd1   :  { %v721_v15 = vpack.c.bf16 %v553_v11, %v538_v31  ;;  %v156_v31 = vld [vmem:[#allocation3 + $0x2c4] sm:$0x3f] }
  0xd2   :  { %1198 = vmatmul.bf16.gmra.mxu3 %v719_v7  ;;  %1247 = vmatmul.bf16.gmra.mxu1 %v720_v10  ;;  %v1218_v59 = vpop.f32.mrf.mxu1  ;;  %v162_v7 = vld [vmem:[#allocation3 + $0x2ee] sm:$0x3f]  ;;  %v683_v10 = vpack.c.bf16 %v1975_v5, %v1969_v55  ;;  %v170_v5 = vld [vmem:[#allocation3 + $0x326] sm:$0x3f] }
  0xd3   :  { %1296 = vmatmul.bf16.gmra.mxu2 %v721_v15  ;;  %v495_v46 = vld.sshfl [vmem:[#allocation1 + $0x20] sm:$0xff pattern:$0x73625140]  ;;  %v2036_v49 = vld.sshfl [vmem:[#allocation1 + $0x28] sm:$0xff pattern:$0x73625140]  ;;  %v1219_v63 = vadd.f32 %v1218_v59, %v1170_v56  ;;  %v689_v59 = vpack.c.bf16 %v1990_v1, %v1981_v39 }
  0xd4   :  { %v2038_v29 = vld.sshfl [vmem:[#allocation1 + $0x30] sm:$0xff pattern:$0x73625140]  ;;  %v709_v30 = vpack.c.bf16 %v495_v46, %v480_v48  ;;  %v673_v48 = vpack.c.bf16 %v1949_v42, %v1947_v28  ;;  %v174_v56 = vld [vmem:[#allocation3 + $0x342] sm:$0x3f] }
  0xd5   :  { %502 = vst [vmem:[#allocation1 + $0x20] ss:$4 sm:$0xff] %v152_v24  ;;  %v178_v39 = vld [vmem:[#allocation3 + $0x35e] sm:$0x3f] }
  0xd6   :  { %1384 = vmatmul.bf16.gmra.mxu0 %v709_v30  ;;  %503 = vst [vmem:[#allocation1 + $0x21] ss:$4 sm:$0xff] %v154_v21 }
  0xd7   :  { %504 = vst [vmem:[#allocation1 + $0x22] ss:$4 sm:$0xff] %v156_v31  ;;  %v1267_v28 = vpop.f32.mrf.mxu2  ;;  %v172_v31 = vld [vmem:[#allocation3 + $0x334] sm:$0x3f] }
  0xd8   :  { %505 = vst [vmem:[#allocation1 + $0x23] ss:$4 sm:$0xff] %v158_v52  ;;  %v2055_v53 = vadd.f32 %v1267_v28, %v1219_v63  ;;  %v2063_v52 = vpop.f32.mrf.mxu0  ;;  %v690_v63 = vpack.c.bf16 %v1992_v2, %v1983_v40  ;;  %v180_v28 = vld [vmem:[#allocation3 + $0x36c] sm:$0x3f] }
  0xda   :  { %v2057_v55 = vpop.f32.mrf.mxu1 }
  0xdd   :  { %v1174_v42 = vpop.f32.mrf.mxu3 }
  0xdf   :  { %v510_v37 = vld.sshfl [vmem:[#allocation1 + $0x20] sm:$0xff pattern:$0x73625140]  ;;  %v2050_v11 = vld.sshfl [vmem:[#allocation1 + $0x28] sm:$0xff pattern:$0x73625140] }
  0xe0   :  { %v2052_v15 = vld.sshfl [vmem:[#allocation1 + $0x30] sm:$0xff pattern:$0x73625140]  ;;  %v2077_v1 = vpop.f32.mrf.mxu0 }
  0xe1   :  { %517 = vst [vmem:[#allocation1 + $0x20] ss:$4 sm:$0xff] %v160_v3 }
  0xe2   :  { %1310 = vmatmul.bf16.vlgmr.msrb.gmra.mxu3 %v673_v48  ;;  %1413 = vmatmul.bf16.vlgmr.msrb.gmra.mxu1 %v682_v45  ;;  %518 = vst [vmem:[#allocation1 + $0x21] ss:$4 sm:$0xff] %v162_v7  ;;  %v1175_v48 = vadd.f32 %v2023_v36, %v1174_v42  ;;  %v2072_v45 = vpop.f32.mrf.mxu2  ;;  %v1223_v7 = vpop.f32.mrf.mxu1 }
  0xe3   :  { %1743 = vmatmul.msk.bf16.vlgmr.msrb.gmra.mxu2 %vm1130_vm0, %v683_v10  ;;  %519 = vst [vmem:[#allocation1 + $0x22] ss:$4 sm:$0xff] %v164_v12 }
  0xe4   :  { %520 = vst [vmem:[#allocation1 + $0x23] ss:$4 sm:$0xff] %v166_v17  ;;  %v1224_v57 = vadd.f32 %v1223_v7, %v1175_v48 }
  0xe5   :  { %v2074_v3 = vpop.f32.mrf.mxu3 }
  0xea   :  { %v1272_v10 = vpop.f32.mrf.mxu2  ;;  %v2083_v17 = vpop.f32.mrf.mxu1 }
  0xeb   :  { %v525_v24 = vld.sshfl [vmem:[#allocation1 + $0x20] sm:$0xff pattern:$0x73625140]  ;;  %v2059_v21 = vld.sshfl [vmem:[#allocation1 + $0x28] sm:$0xff pattern:$0x73625140] }
  0xec   :  { %v2061_v46 = vld.sshfl [vmem:[#allocation1 + $0x30] sm:$0xff pattern:$0x73625140]  ;;  %v716_v30 = vpack.c.bf16 %v525_v24, %v510_v37  ;;  %v2081_v37 = vadd.f32 %v1272_v10, %v1224_v57  ;;  %v696_v24 = vpack.c.bf16 %v2002_v61, %v1996_v23  ;;  %v703_v10 = vpack.c.bf16 %v2014_v8, %v2008_v22 }
  0xed   :  { %532 = vst [vmem:[#allocation1 + $0x20] ss:$4 sm:$0xff] %v168_v4  ;;  %v182_v4 = vld [vmem:[#allocation3 + $0x37a] sm:$0x3f] }
  0xee   :  { %1389 = vmatmul.bf16.gmra.mxu0 %v716_v30  ;;  %533 = vst [vmem:[#allocation1 + $0x21] ss:$4 sm:$0xff] %v170_v5  ;;  %v687_v5 = vpack.c.bf16 %v1965_v43, %v1959_v27  ;;  %v697_v30 = vpack.c.bf16 %v2004_v62, %v1998_v25  ;;  %v711_v25 = vpack.c.bf16 %v2038_v29, %v2028_v58 }
  0xef   :  { %534 = vst [vmem:[#allocation1 + $0x22] ss:$4 sm:$0xff] %v172_v31 }
  0xf0   :  { %535 = vst [vmem:[#allocation1 + $0x23] ss:$4 sm:$0xff] %v174_v56 }
  0xf2   :  { %1315 = vmatmul.bf16.gmra.mxu3 %v680_v54  ;;  %1418 = vmatmul.bf16.gmra.mxu1 %v689_v59  ;;  %v2094_v54 = vpop.f32.mrf.mxu2  ;;  %v1228_v56 = vpop.f32.mrf.mxu1 }
  0xf3   :  { %1744 = vmatmul.msk.bf16.gmra.mxu2 %vm1130_vm0, %v690_v63  ;;  %v2096_v63 = vpop.f32.mrf.mxu0 }
  0xf5   :  { %v1179_v12 = vpop.f32.mrf.mxu3 }
  0xf6   :  { %v1180_v31 = vadd.f32 %v2023_v36, %v1179_v12  ;;  %v704_v12 = vpack.c.bf16 %v2016_v9, %v2010_v26 }
  0xf7   :  { %v540_v40 = vld.sshfl [vmem:[#allocation1 + $0x20] sm:$0xff pattern:$0x73625140]  ;;  %v2079_v2 = vld.sshfl [vmem:[#allocation1 + $0x28] sm:$0xff pattern:$0x73625140] }
  0xf8   :  { %v2085_v42 = vld.sshfl [vmem:[#allocation1 + $0x30] sm:$0xff pattern:$0x73625140]  ;;  %v1229_v59 = vadd.f32 %v1228_v56, %v1180_v31  ;;  %v701_v31 = vpack.c.bf16 %v1988_v50, %v1979_v32 }
  0xf9   :  { %547 = vst [vmem:[#allocation1 + $0x20] ss:$4 sm:$0xff] %v176_v6 }
  0xfa   :  { %548 = vst [vmem:[#allocation1 + $0x21] ss:$4 sm:$0xff] %v178_v39  ;;  %v1277_v23 = vpop.f32.mrf.mxu2  ;;  %v1230_v62 = vpop.f32.mrf.mxu1  ;;  %v694_v39 = vpack.c.bf16 %v1977_v14, %v1971_v0  ;;  %v675_v0 = vpack.c.bf16 %v1961_v33, %v1955_v18 }
  0xfb   :  { %549 = vst [vmem:[#allocation1 + $0x22] ss:$4 sm:$0xff] %v180_v28  ;;  %v2101_v61 = vadd.f32 %v1277_v23, %v1229_v59  ;;  %v2104_v57 = vpop.f32.mrf.mxu0 }
  0xfc   :  { %550 = vst [vmem:[#allocation1 + $0x23] ss:$4 sm:$0xff] %v182_v4 }
  0xfd   :  { %v1181_v48 = vpop.f32.mrf.mxu3 }
  0xfe   :  { %v1182_v7 = vadd.f32 %v2023_v36, %v1181_v48  ;;  %v717_v48 = vpack.c.bf16 %v2059_v21, %v2050_v11 }
 0x102   :  { %1320 = vmatmul.bf16.gmra.mxu3 %v687_v5  ;;  %1423 = vmatmul.bf16.gmra.mxu1 %v696_v24  ;;  %v1279_v29 = vpop.f32.mrf.mxu2  ;;  %v718_v24 = vpack.c.bf16 %v2061_v46, %v2052_v15  ;;  %v710_v15 = vpack.c.bf16 %v2036_v49, %v2026_v51 }
 0x103   :  { %1745 = vmatmul.msk.bf16.gmra.mxu2 %vm1130_vm0, %v697_v30  ;;  %v555_v27 = vld.sshfl [vmem:[#allocation1 + $0x20] sm:$0xff pattern:$0x73625140]  ;;  %v2120_v14 = vpop.f32.mrf.mxu0 }
 0x104   :  { %v723_v43 = vpack.c.bf16 %v555_v27, %v540_v40  ;;  %v1231_v40 = vadd.f32 %v1230_v62, %v1182_v7  ;;  %v676_v27 = vpack.c.bf16 %v1963_v34, %v1957_v19  ;;  %v708_v19 = vpack.c.bf16 %v2000_v44, %v1994_v16 }
 0x105   :  { %v715_v16 = vpack.c.bf16 %v2012_v47, %v2006_v13 }
 0x106   :  { %1394 = vmatmul.bf16.gmra.mxu0 %v723_v43  ;;  %v2113_v28 = vadd.f32 %v1279_v29, %v1231_v40 }
 0x108   :  { %v1233_v4 = vpop.f32.mrf.mxu1 }
 0x10b   :  { %v2129_v33 = vpop.f32.mrf.mxu0 }
 0x10d   :  { %v1184_v6 = vpop.f32.mrf.mxu3 }
 0x10e   :  { %v1185_v58 = vadd.f32 %v2023_v36, %v1184_v6  ;;  %v1282_v22 = vpop.f32.mrf.mxu2 }
 0x110   :  { %v1234_v5 = vadd.f32 %v1233_v4, %v1185_v58  ;;  %v1235_v8 = vpop.f32.mrf.mxu1 }
 0x112   :  { %1325 = vmatmul.bf16.gmra.mxu3 %v694_v39  ;;  %1428 = vmatmul.bf16.gmra.mxu1 %v703_v10  ;;  %v2122_v26 = vadd.f32 %v1282_v22, %v1234_v5  ;;  %v556_v10 = vld.sshfl [vmem:[#allocation1 + $0x28] sm:$0xff pattern:$0x73625140] }
 0x113   :  { %1746 = vmatmul.msk.bf16.gmra.mxu2 %vm1130_vm0, %v704_v12  ;;  %v2142_v23 = vpop.f32.mrf.mxu0  ;;  %v557_v12 = vld.sshfl [vmem:[#allocation1 + $0x30] sm:$0xff pattern:$0x73625140]  ;;  %v724_v4 = vpack.c.bf16 %v556_v10, %v2079_v2  ;;  %v554_v2 = vld.sshfl [vmem:[#allocation1 + $0x18] sm:$0xff pattern:$0x73625140] }
 0x115   :  { %v1186_v9 = vpop.f32.mrf.mxu3 }
 0x116   :  { %1408 = vmatmul.bf16.vlgmr.msra.gmra.mxu0 %v675_v0  ;;  %v1187_v30 = vadd.f32 %v2023_v36, %v1186_v9  ;;  %v1284_v18 = vpop.f32.mrf.mxu2  ;;  %v725_v0 = vpack.c.bf16 %v557_v12, %v2085_v42 }
 0x118   :  { %v1236_v46 = vadd.f32 %v1235_v8, %v1187_v30 }
 0x11a   :  { %v2131_v56 = vadd.f32 %v1284_v18, %v1236_v46 }
 0x11b   :  { %v2150_v6 = vpop.f32.mrf.mxu0 }
 0x120   :  { %v1238_v59 = vpop.f32.mrf.mxu1 }
 0x122   :  { %1330 = vmatmul.bf16.gmra.mxu3 %v701_v31  ;;  %1433 = vmatmul.bf16.gmra.mxu1 %v710_v15  ;;  %v722_v15 = vpack.c.bf16 %v554_v2, %v2018_v35 }
 0x123   :  { %1747 = vmatmul.msk.bf16.gmra.mxu2 %vm1130_vm0, %v711_v25  ;;  %v2155_v44 = vpop.f32.mrf.mxu0 }
 0x125   :  { %v1189_v32 = vpop.f32.mrf.mxu3 }
 0x126   :  { %v1190_v50 = vadd.f32 %v2023_v36, %v1189_v32  ;;  %1742 = vmatmul.msk.bf16.vlgmr.msrb.gmra.mxu0 %vm1130_vm0, %v676_v27  ;;  %v1287_v49 = vpop.f32.mrf.mxu2 }
 0x128   :  { %v1239_v51 = vadd.f32 %v1238_v59, %v1190_v50  ;;  %v1240_v7 = vpop.f32.mrf.mxu1 }
 0x12a   :  { %v2140_v43 = vadd.f32 %v1287_v49, %v1239_v51 }
 0x12d   :  { %v1191_v62 = vpop.f32.mrf.mxu3 }
 0x12e   :  { %v1192_v11 = vadd.f32 %v2023_v36, %v1191_v62  ;;  %v1289_v21 = vpop.f32.mrf.mxu2 }
 0x130   :  { %v1241_v34 = vadd.f32 %v1240_v7, %v1192_v11 }
 0x132   :  { %v2147_v25 = vadd.f32 %v1289_v21, %v1241_v34  ;;  %1335 = vmatmul.bf16.gmra.mxu3 %v708_v19  ;;  %1438 = vmatmul.bf16.gmra.mxu1 %v717_v48  ;;  %v1167_v34 = vadd.f32 %v2023_v36, %v2030_v20  ;;  %v1172_v20 = vadd.f32 %v2023_v36, %v2063_v52 }
 0x133   :  { %1748 = vmatmul.msk.bf16.gmra.mxu2 %vm1130_vm0, %v718_v24 }
 0x134   :  { %v1216_v12 = vadd.f32 %v2034_v41, %v1167_v34 }
 0x137   :  { %v2163_v13 = vpop.f32.mrf.mxu0 }
 0x138   :  { %v1243_v39 = vpop.f32.mrf.mxu1 }
 0x13d   :  { %v1194_v40 = vpop.f32.mrf.mxu3 }
 0x13e   :  { %v1195_v58 = vadd.f32 %v2023_v36, %v1194_v40  ;;  %v1292_v29 = vpop.f32.mrf.mxu2 }
 0x13f   :  { %v2168_v46 = vpop.f32.mrf.mxu0 }
 0x140   :  { %v1244_v5 = vadd.f32 %v1243_v39, %v1195_v58  ;;  %v1245_v8 = vpop.f32.mrf.mxu1 }
 0x142   :  { %v2159_v24 = vadd.f32 %v1292_v29, %v1244_v5  ;;  %1340 = vmatmul.bf16.gmra.mxu3 %v715_v16  ;;  %1443 = vmatmul.bf16.gmra.mxu1 %v724_v4  ;;  %v1265_v29 = vadd.f32 %v2042_v60, %v1216_v12 }
 0x143   :  { %1749 = vmatmul.msk.bf16.gmra.mxu2 %vm1130_vm0, %v725_v0 }
 0x145   :  { %v1196_v22 = vpop.f32.mrf.mxu3 }
 0x146   :  { %v1197_v9 = vadd.f32 %v2023_v36, %v1196_v22  ;;  %v1294_v30 = vpop.f32.mrf.mxu2 }
 0x148   :  { %v1246_v31 = vadd.f32 %v1245_v8, %v1197_v9 }
 0x14a   :  { %v2165_v47 = vadd.f32 %v1294_v30, %v1246_v31  ;;  %v1221_v30 = vadd.f32 %v2057_v55, %v1172_v20 }
 0x14c   :  { %v1270_v2 = vadd.f32 %v2072_v45, %v1221_v30 }
 0x14f   :  { %v1248_v42 = vpop.f32.mrf.mxu1 }
 0x152   :  { %1345 = vmatmul.bf16.gmra.mxu3 %v722_v15 }
 0x153   :  { %v2173_v51 = vpop.f32.mrf.mxu0 }
 0x155   :  { %v1199_v18 = vpop.f32.mrf.mxu3 }
 0x156   :  { %v1200_v59 = vadd.f32 %v2023_v36, %v1199_v18  ;;  %v1297_v48 = vpop.f32.mrf.mxu2 }
 0x157   :  { %v1250_v27 = vpop.f32.mrf.mxu1 }
 0x158   :  { %v1249_v32 = vadd.f32 %v1248_v42, %v1200_v59 }
 0x15a   :  { %v2171_v50 = vadd.f32 %v1297_v48, %v1249_v32 }
 0x15b   :  { %v2183_v10 = vpop.f32.mrf.mxu0 }
 0x15d   :  { %v1201_v49 = vpop.f32.mrf.mxu3 }
 0x15e   :  { %v1202_v62 = vadd.f32 %v2023_v36, %v1201_v49  ;;  %v1299_v7 = vpop.f32.mrf.mxu2 }
 0x15f   :  { %v1414_v11 = vpop.f32.mrf.mxu1 }
 0x160   :  { %v1251_v35 = vadd.f32 %v1250_v27, %v1202_v62  ;;  %v1177_v62 = vadd.f32 %v2023_v36, %v2074_v3 }
 0x162   :  { %v2176_v19 = vadd.f32 %v1299_v7, %v1251_v35 }
 0x165   :  { %v1311_v21 = vpop.f32.mrf.mxu3 }
 0x166   :  { %v2181_v39 = vadd.f32 %v1311_v21, %v2032_v38  ;;  %v1463_v40 = vpop.f32.mrf.mxu2 }
 0x167   :  { %v1416_v58 = vpop.f32.mrf.mxu1 }
 0x16b   :  { %v2189_v0 = vpop.f32.mrf.mxu0 }
 0x16d   :  { %v1313_v16 = vpop.f32.mrf.mxu3 }
 0x16e   :  { %v2187_v4 = vadd.f32 %v1313_v16, %v1265_v29  ;;  %v1465_v5 = vpop.f32.mrf.mxu2 }
 0x16f   :  { %v1419_v22 = vpop.f32.mrf.mxu1 }
 0x173   :  { %v2196_v60 = vpop.f32.mrf.mxu0 }
 0x175   :  { %v1316_v38 = vpop.f32.mrf.mxu3 }
 0x176   :  { %v1317_v8 = vadd.f32 %v1316_v38, %v2055_v53  ;;  %v1468_v9 = vpop.f32.mrf.mxu2 }
 0x177   :  { %v1421_v18 = vpop.f32.mrf.mxu1 }
 0x178   :  { %v1366_v41 = vadd.f32 %v2104_v57, %v1317_v8 }
 0x17a   :  { %v1415_v31 = vadd.f32 %v1414_v11, %v1366_v41 }
 0x17c   :  { %v2199_v15 = vadd.f32 %v1463_v40, %v1415_v31 }
 0x17d   :  { %v1318_v42 = vpop.f32.mrf.mxu3 }
 0x17e   :  { %v1319_v59 = vadd.f32 %v1318_v42, %v1270_v2  ;;  %v1470_v48 = vpop.f32.mrf.mxu2 }
 0x17f   :  { %v1424_v45 = vpop.f32.mrf.mxu1 }
 0x180   :  { %v1368_v52 = vadd.f32 %v2120_v14, %v1319_v59  ;;  %v1226_v14 = vadd.f32 %v2083_v17, %v1177_v62 }
 0x182   :  { %v1417_v27 = vadd.f32 %v1416_v58, %v1368_v52  ;;  %v1275_v34 = vadd.f32 %v2094_v54, %v1226_v14 }
 0x183   :  { %v2202_v53 = vpop.f32.mrf.mxu0 }
 0x184   :  { %v2204_v32 = vadd.f32 %v1465_v5, %v1417_v27 }
 0x185   :  { %v1321_v55 = vpop.f32.mrf.mxu3 }
 0x186   :  { %v1322_v57 = vadd.f32 %v1321_v55, %v2081_v37  ;;  %v1499_v49 = vpack.c.bf16 %v2204_v32, %v2199_v15  ;;  %v1473_v11 = vpop.f32.mrf.mxu2  ;;  %v1361_v55 = vadd.f32 %v2077_v1, %v2181_v39 }
 0x187   :  { %v1426_v29 = vpop.f32.mrf.mxu1 }
 0x188   :  { %v1371_v7 = vadd.f32 %v2129_v33, %v1322_v57 }
 0x18a   :  { %v1420_v35 = vadd.f32 %v1419_v22, %v1371_v7 }
 0x18b   :  { %v2214_v21 = vpop.f32.mrf.mxu0 }
 0x18c   :  { %v2216_v40 = vadd.f32 %v1468_v9, %v1420_v35 }
 0x18d   :  { %v1323_v37 = vpop.f32.mrf.mxu3 }
 0x18e   :  { %v1324_v12 = vadd.f32 %v1323_v37, %v1275_v34  ;;  %v1475_v5 = vpop.f32.mrf.mxu2 }
 0x18f   :  { %v1429_v38 = vpop.f32.mrf.mxu1 }
 0x190   :  { %v1373_v58 = vadd.f32 %v2142_v23, %v1324_v12 }
 0x192   :  { %v1422_v16 = vadd.f32 %v1421_v18, %v1373_v58 }
 0x193   :  { %v1409_v36 = vpop.f32.mrf.mxu0 }
 0x194   :  { %v2219_v3 = vadd.f32 %v1470_v48, %v1422_v16  ;;  %v1410_v57 = vadd.f32 %v1409_v36, %v1361_v55 }
 0x195   :  { %v1326_v33 = vpop.f32.mrf.mxu3 }
 0x196   :  { %v1327_v17 = vadd.f32 %v1326_v33, %v2101_v61  ;;  %v1500_v54 = vpack.c.bf16 %v2219_v3, %v2216_v40  ;;  %v1478_v30 = vpop.f32.mrf.mxu2 }
 0x197   :  { %v1431_v59 = vpop.f32.mrf.mxu1 }
 0x198   :  { %v1376_v22 = vadd.f32 %v2150_v6, %v1327_v17 }
 0x19a   :  { %v1425_v20 = vadd.f32 %v1424_v45, %v1376_v22 }
 0x19b   :  { %v1411_v8 = vpop.f32.mrf.mxu0 }
 0x19c   :  { %v2225_v9 = vadd.f32 %v1473_v11, %v1425_v20 }
 0x19d   :  { %v1328_v23 = vpop.f32.mrf.mxu3 }
 0x19e   :  { %v1329_v41 = vadd.f32 %v1328_v23, %v2113_v28  ;;  %v1480_v52 = vpop.f32.mrf.mxu2  ;;  %v1363_v28 = vadd.f32 %v2096_v63, %v2187_v4 }
 0x19f   :  { %v1434_v37 = vpop.f32.mrf.mxu1 }
 0x1a0   :  { %v1378_v31 = vadd.f32 %v2155_v44, %v1329_v41  ;;  %v1412_v45 = vadd.f32 %v1411_v8, %v1363_v28 }
 0x1a2   :  { %v1427_v2 = vadd.f32 %v1426_v29, %v1378_v31 }
 0x1a3   :  { %v1458_v42 = vpop.f32.mrf.mxu0 }
 0x1a4   :  { %v2229_v18 = vadd.f32 %v1475_v5, %v1427_v2  ;;  %v1459_v11 = vadd.f32 %v1458_v42, %v1410_v57 }
 0x1a5   :  { %v1331_v61 = vpop.f32.mrf.mxu3 }
 0x1a6   :  { %v1332_v48 = vadd.f32 %v1331_v61, %v2122_v26  ;;  %v1501_v6 = vpack.c.bf16 %v2229_v18, %v2225_v9  ;;  %v1483_v12 = vpop.f32.mrf.mxu2 }
 0x1a7   :  { %v1436_v4 = vpop.f32.mrf.mxu1 }
 0x1a8   :  { %v1381_v27 = vadd.f32 %v2163_v13, %v1332_v48 }
 0x1aa   :  { %v1430_v44 = vadd.f32 %v1429_v38, %v1381_v27 }
 0x1ab   :  { %v1460_v62 = vpop.f32.mrf.mxu0 }
 0x1ac   :  { %v1479_v7 = vadd.f32 %v1478_v30, %v1430_v44  ;;  %v1461_v14 = vadd.f32 %v1460_v62, %v1412_v45 }
 0x1ad   :  { %v1333_v26 = vpop.f32.mrf.mxu3 }
 0x1ae   :  { %v1334_v35 = vadd.f32 %v1333_v26, %v2131_v56  ;;  %v1498_v34 = vpack.c.bf16 %v1461_v14, %v1459_v11  ;;  %v1485_v16 = vpop.f32.mrf.mxu2 }
 0x1af   :  { %v1439_v20 = vpop.f32.mrf.mxu1 }
 0x1b0   :  { %v1383_v13 = vadd.f32 %v2168_v46, %v1334_v35 }
 0x1b2   :  { %v1432_v58 = vadd.f32 %v1431_v59, %v1383_v13 }
 0x1b4   :  { %v1481_v1 = vadd.f32 %v1480_v52, %v1432_v58 }
 0x1b5   :  { %v1336_v39 = vpop.f32.mrf.mxu3 }
 0x1b6   :  { %v1502_v29 = vpack.c.bf16 %v1481_v1, %v1479_v7  ;;  %v1337_v63 = vadd.f32 %v1336_v39, %v2140_v43  ;;  %v1488_v8 = vpop.f32.mrf.mxu2 }
 0x1b7   :  { %v1441_v31 = vpop.f32.mrf.mxu1 }
 0x1b8   :  { %v1386_v5 = vadd.f32 %v2173_v51, %v1337_v63 }
 0x1ba   :  { %v1435_v17 = vadd.f32 %v1434_v37, %v1386_v5 }
 0x1bc   :  { %v1484_v46 = vadd.f32 %v1483_v12, %v1435_v17 }
 0x1bd   :  { %v1338_v36 = vpop.f32.mrf.mxu3 }
 0x1be   :  { %v1339_v33 = vadd.f32 %v1338_v36, %v2147_v25  ;;  %v1490_v42 = vpop.f32.mrf.mxu2 }
 0x1bf   :  { %v1444_v55 = vpop.f32.mrf.mxu1 }
 0x1c0   :  { %v1388_v56 = vadd.f32 %v2183_v10, %v1339_v33 }
 0x1c2   :  { %v1437_v22 = vadd.f32 %v1436_v4, %v1388_v56 }
 0x1c4   :  { %v1486_v38 = vadd.f32 %v1485_v16, %v1437_v22 }
 0x1c5   :  { %v1341_v23 = vpop.f32.mrf.mxu3 }
 0x1c6   :  { %v1503_v30 = vpack.c.bf16 %v1486_v38, %v1484_v46  ;;  %v1342_v41 = vadd.f32 %v1341_v23, %v2159_v24  ;;  %v1493_v44 = vpop.f32.mrf.mxu2 }
 0x1c7   :  { %v1446_v62 = vpop.f32.mrf.mxu1 }
 0x1c8   :  { %v1391_v43 = vadd.f32 %v2189_v0, %v1342_v41 }
 0x1ca   :  { %v1440_v25 = vadd.f32 %v1439_v20, %v1391_v43 }
 0x1cc   :  { %v1489_v59 = vadd.f32 %v1488_v8, %v1440_v25 }
 0x1cd   :  { %v1343_v2 = vpop.f32.mrf.mxu3 }
 0x1ce   :  { %v1344_v51 = vadd.f32 %v1343_v2, %v2165_v47 }
 0x1d0   :  { %v1393_v61 = vadd.f32 %v2196_v60, %v1344_v51  ;;  %v1495_v60 = vpop.f32.mrf.mxu2 }
 0x1d2   :  { %v1442_v10 = vadd.f32 %v1441_v31, %v1393_v61 }
 0x1d4   :  { %v1491_v48 = vadd.f32 %v1490_v42, %v1442_v10 }
 0x1d5   :  { %v1346_v52 = vpop.f32.mrf.mxu3 }
 0x1d6   :  { %v1504_v27 = vpack.c.bf16 %v1491_v48, %v1489_v59  ;;  %v1347_v28 = vadd.f32 %v1346_v52, %v2171_v50  ;;  %v1506_v50 = vld [vmem:[%s2274_s3] sm:$0x1] }
 0x1d8   :  { %v1396_v24 = vadd.f32 %v2202_v53, %v1347_v28 }
 0x1da   :  { %v1445_v45 = vadd.f32 %v1444_v55, %v1396_v24 }
 0x1dc   :  { %v1494_v11 = vadd.f32 %v1493_v44, %v1445_v45 }
 0x1dd   :  { %v1348_v0 = vpop.f32.mrf.mxu3 }
 0x1de   :  { %v1349_v57 = vadd.f32 %v1348_v0, %v2176_v19  ;;  %v1508_v19 = vstv %s2275_s4 }
 0x1e0   :  { %v1398_v47 = vadd.f32 %v2214_v21, %v1349_v57 }
 0x1e2   :  { %v1447_v7 = vadd.f32 %v1446_v62, %v1398_v47 }
 0x1e4   :  { %v1496_v14 = vadd.f32 %v1495_v60, %v1447_v7 }
 0x1e6   :  { %v1505_v26 = vpack.c.bf16 %v1496_v14, %v1494_v11 }
 0x1e8   :  { %1509 = vmatpush.bf16.xpose.msra.mxu3 %v1505_v26 }
 0x1f0   :  { %1510 = vmatpush.bf16.xpose.msra.mxu3 %v1504_v27 }
 0x1f8   :  { %1511 = vmatpush.bf16.xpose.msra.mxu3 %v1503_v30 }
 0x200   :  { %1512 = vmatpush.bf16.xpose.msra.mxu3 %v1502_v29 }
 0x208   :  { %1513 = vmatpush.bf16.xpose.msra.mxu3 %v1501_v6 }
 0x210   :  { %1514 = vmatpush.bf16.xpose.msra.mxu3 %v1500_v54 }
 0x218   :  { %1515 = vmatpush.bf16.xpose.msra.mxu3 %v1499_v49 }
 0x220   :  { %1516 = vmatpush.bf16.xpose.msra.mxu3 %v1498_v34 }
 0x227   :  { %1517 = vmatmul.bf16.vlgmr.msra.gmra.mxu3 %v1506_v50 }
 0x2aa   :  { %v1518_v53 = vpop.f32.mrf.mxu3 }
 0x2ab   :  { %v1519_v21 = vadd.f32 %v1518_v53, %v1508_v19 }
 0x2ad   :  { %v1522_v15 = vmul.f32 %v1519_v21, %v1519_v21 }
 0x2af   :  { %1523 = vst [vmem:[#allocation8] sm:$0x1] %v1522_v15 }
 0x2b0   :  { %1534 = dma.vmem_to_hbm [thread:$0]  %s1530_s11, 16, %s1532_s14, [#allocation5]  }
 0x2b2   :  { %v1520_v32 = vpop.f32.mrf.mxu3 }
 0x2b3   :  { %1902 = dma.done.wait [#allocation5], 16  }
 0x2b4   :  { %1903 = vsyncadd [#allocation5], 4294967280 }
 0x2b5   :  { %1539 = vsyncpa [#allocation4], 1 }
 0x2b6   :  { %1540 = vsyncpa [#allocation7], 1 }
 0x2b7   :  { %1541 = vsyncpa [#allocation5], 1 }

</bundles_post_ra>
